<compile_context>
chip_gen: v6e
topology: v6e:2x2x1
jax: 0.10.0
libtpu: 0.0.40
codegen_flags: <defaults>
</compile_context>

<pallas_src>
import jax
import jax.numpy as jnp
from jax.experimental import pallas as pl
from jax.experimental.pallas import tpu as pltpu


_HIDDEN = (32, 64, 128, 256)


def _round_up(x, m):
    return ((x + m - 1) // m) * m


def _cdiv(a, b):
    return (a + b - 1) // b


def _make_netq_kernel(dot_dtype, precision):
    """Fused forward for one batch tile: 4x (matmul + f32 bias + ReLU) + final linear."""

    def kernel(x_ref,
               w1_ref, b1_ref,
               w2_ref, b2_ref,
               w3_ref, b3_ref,
               w4_ref, b4_ref,
               w5_ref, b5_ref,
               o_ref):
        # Cast to the matmul dtype inside the kernel (free VPU work) instead of a
        # separate wrapper-side pass over x in HBM.
        h = x_ref[...].astype(dot_dtype)
        # Hidden layers 1..4 (statically unrolled).
        for w_ref, b_ref in ((w1_ref, b1_ref), (w2_ref, b2_ref),
                             (w3_ref, b3_ref), (w4_ref, b4_ref)):
            acc = jnp.dot(h, w_ref[...], preferred_element_type=jnp.float32,
                          precision=precision)
            # bias + ReLU in f32 (no bf16 VPU on v5e); feed the MXU in dot dtype again.
            h = jnp.maximum(acc + b_ref[...], 0.0).astype(dot_dtype)
        # Output layer (no activation); o_ref last dim == full array dim (no lane padding).
        out = jnp.dot(h, w5_ref[...], preferred_element_type=jnp.float32,
                      precision=precision) + b5_ref[...]
        o_ref[...] = out.astype(o_ref.dtype)

    return kernel


def _choose_tile(B, batch_tile):
    """Rows per grid step: multiple of 16 (bf16 sublane packing, covers the f32 rule).

    When the batch spans more than one tile, best-effort shrink the tile so the grid
    has an even number of steps (keeps both v7x TensorCores busy on the last step).
    """
    b16 = _round_up(max(B, 1), 16)
    tile = min(_round_up(max(batch_tile, 16), 16), b16)
    if b16 > tile:
        steps = _cdiv(B, tile)
        if steps % 2:
            steps += 1
        tile = max(16, _round_up(_cdiv(B, steps), 16))
    return tile


def netq_forward(x, params, *, batch_tile=2048, use_bf16=True, out_dtype=jnp.float32):
    """NetQ forward.

    x: (B, dim_in) f32.
    params: list of (W, b) with W shaped (in_features, out_features), b (1, out_features).
    batch_tile: rows per grid step (primary knob; sweep 1024-4096 per chip generation).
    use_bf16: bf16 MXU inputs + f32 accumulation (fast) vs. exact f32 (HIGHEST precision).
    out_dtype: float32 (default) or bfloat16 to halve output writeback.
    """
    x = jnp.asarray(x, jnp.float32)
    B, dim_in = x.shape
    dim_out = params[-1][0].shape[1]
    dot_dtype = jnp.bfloat16 if use_bf16 else jnp.float32
    precision = None if use_bf16 else jax.lax.Precision.HIGHEST

    tile = _choose_tile(B, batch_tile)
    grid = _cdiv(B, tile)  # ragged tail handled by Pallas block masking (no jnp.pad copy)

    flat_args = [x]
    in_specs = [pl.BlockSpec((tile, dim_in), lambda i: (i, 0))]
    for (w, b) in params:
        w = jnp.asarray(w, jnp.float32).astype(dot_dtype)   # pre-cast: reused every step
        b = jnp.asarray(b, jnp.float32).reshape(1, -1)      # biases stay f32 (VPU work)
        flat_args.append(w)
        flat_args.append(b)
        # Constant index_map: each weight/bias is DMA'd into VMEM once and stays
        # resident across the whole (parallel) batch grid.
        in_specs.append(pl.BlockSpec(w.shape, lambda i: (0, 0)))
        in_specs.append(pl.BlockSpec(b.shape, lambda i: (0, 0)))

    # Unpadded output block: last dim equals the full array dim (legal); avoids the
    # previous 16x-inflated padded writeback + post-kernel slice.
    out_spec = pl.BlockSpec((tile, dim_out), lambda i: (i, 0))

    widths = [dim_in, *_HIDDEN, dim_out]
    out_itemsize = jnp.dtype(out_dtype).itemsize
    flops = 2 * B * sum(widths[i] * widths[i + 1] for i in range(len(widths) - 1))
    param_bytes = sum(int(a.size) * a.dtype.itemsize for a in flat_args[1:])
    bytes_accessed = B * dim_in * 4 + B * dim_out * out_itemsize + param_bytes
    cost = pl.CostEstimate(flops=flops, transcendentals=0, bytes_accessed=bytes_accessed)

    # Scoped-VMEM estimate: only set an explicit limit if a very large tile would blow
    # past v5e's 16 MiB default (v6e/v7x default is 32 MiB).  2x headroom, 64 MiB cap.
    dot_bytes = jnp.dtype(dot_dtype).itemsize
    act_bytes = tile * sum(widths) * (4 + dot_bytes)               # f32 acts + dot-dtype copies
    io_bytes = 2 * 2 * tile * (dim_in * 4 + dim_out * out_itemsize)  # double-buffered in/out
    budget = 2 * (act_bytes + io_bytes + 2 * param_bytes) + (2 << 20)
    compiler_kwargs = {}
    if budget > (16 << 20):
        compiler_kwargs["vmem_limit_bytes"] = int(min(budget, 64 << 20))

    out = pl.pallas_call(
        _make_netq_kernel(dot_dtype, precision),
        out_shape=jax.ShapeDtypeStruct((B, dim_out), out_dtype),
        grid_spec=pltpu.PrefetchScalarGridSpec(
            num_scalar_prefetch=0,
            grid=(grid,),
            in_specs=in_specs,
            out_specs=out_spec,
        ),
        compiler_params=pltpu.CompilerParams(
            dimension_semantics=("parallel",), **compiler_kwargs),
        cost_estimate=cost,
    )(*flat_args)
    return out


def init_netq_params(key, dim_in, dim_out):
    """Deterministic init mimicking nn.Linear default (uniform +/- 1/sqrt(fan_in))."""
    dims = [dim_in, *_HIDDEN, dim_out]
    params = []
    for i in range(len(dims) - 1):
        fan_in, fan_out = dims[i], dims[i + 1]
        key, kw, kb = jax.random.split(key, 3)
        bound = 1.0 / jnp.sqrt(jnp.float32(fan_in))
        w = jax.random.uniform(kw, (fan_in, fan_out), jnp.float32, -bound, bound)
        b = jax.random.uniform(kb, (1, fan_out), jnp.float32, -bound, bound)
        params.append((w, b))
    return params


def netq_reference(x, params):
    """Pure-JAX f32 reference (true f32 matmuls) for correctness checking."""
    h = x
    for (w, b) in params[:-1]:
        h = jnp.maximum(jnp.dot(h, w, precision=jax.lax.Precision.HIGHEST) + b, 0.0)
    w, b = params[-1]
    return jnp.dot(h, w, precision=jax.lax.Precision.HIGHEST) + b


if __name__ == "__main__":
    key = jax.random.PRNGKey(0)
    dim_in, dim_out = 16, 8
    params = init_netq_params(key, dim_in, dim_out)

    def run_check(B, *, batch_tile, use_bf16, out_dtype=jnp.float32, atol=3e-2, rtol=3e-2):
        kx = jax.random.fold_in(jax.random.PRNGKey(0), B)
        x = jax.random.normal(kx, (B, dim_in), dtype=jnp.float32)
        ref = netq_reference(x, params)
        out = jax.block_until_ready(
            netq_forward(x, params, batch_tile=batch_tile,
                         use_bf16=use_bf16, out_dtype=out_dtype))
        assert out.shape == (B, dim_out), f"bad shape {out.shape}"
        assert out.dtype == jnp.dtype(out_dtype), f"bad dtype {out.dtype}"
        ok = jnp.allclose(out.astype(jnp.float32), ref, atol=atol, rtol=rtol)
        assert ok, f"mismatch (B={B}, bf16={use_bf16}, out_dtype={out_dtype})"

    # Exact-precision path (f32 HIGHEST matmuls): tight tolerance.
    run_check(16, batch_tile=2048, use_bf16=False, atol=1e-5, rtol=1e-5)

    # Performance path (bf16 MXU inputs, f32 accumulation/bias/ReLU).
    run_check(16, batch_tile=2048, use_bf16=True)

    # Ragged batch (B not a multiple of the tile) -> masked tail block, no jnp.pad copy.
    run_check(20, batch_tile=2048, use_bf16=True)

    # Multi-step grid (exercises the parallel batch grid + resident weights).
    run_check(40, batch_tile=16, use_bf16=True)

    # bf16 output option (halves output writeback).
    run_check(16, batch_tile=2048, use_bf16=True, out_dtype=jnp.bfloat16,
              atol=5e-2, rtol=5e-2)

    print("KERNEL_OK")
</pallas_src>

<mosaic_0001>
module attributes {stable_mosaic.version = 11 : i64} {
  func.func @kernel(%arg0: i32, %arg1: memref<16x16xf32, #tpu.memory_space<vmem>>, %arg2: memref<16x32xf32, #tpu.memory_space<vmem>>, %arg3: memref<1x32xf32, #tpu.memory_space<vmem>>, %arg4: memref<32x64xf32, #tpu.memory_space<vmem>>, %arg5: memref<1x64xf32, #tpu.memory_space<vmem>>, %arg6: memref<64x128xf32, #tpu.memory_space<vmem>>, %arg7: memref<1x128xf32, #tpu.memory_space<vmem>>, %arg8: memref<128x256xf32, #tpu.memory_space<vmem>>, %arg9: memref<1x256xf32, #tpu.memory_space<vmem>>, %arg10: memref<256x8xf32, #tpu.memory_space<vmem>>, %arg11: memref<1x8xf32, #tpu.memory_space<vmem>>, %arg12: memref<16x8xf32, #tpu.memory_space<vmem>>) attributes {dimension_semantics = [#tpu.dimension_semantics<parallel>], iteration_bounds = array<i64: 1>, scalar_prefetch = 0 : i64, scratch_operands = 0 : i64, tpu.core_type = #tpu.core_type<tc>, window_params = [{transform_indices = @transform_0, window_bounds = array<i64: 16, 16>}, {pipeline_mode = #tpu.pipeline_mode<synchronous>, transform_indices = @transform_1, window_bounds = array<i64: 16, 32>}, {pipeline_mode = #tpu.pipeline_mode<synchronous>, transform_indices = @transform_2, window_bounds = array<i64: 1, 32>}, {pipeline_mode = #tpu.pipeline_mode<synchronous>, transform_indices = @transform_3, window_bounds = array<i64: 32, 64>}, {pipeline_mode = #tpu.pipeline_mode<synchronous>, transform_indices = @transform_4, window_bounds = array<i64: 1, 64>}, {pipeline_mode = #tpu.pipeline_mode<synchronous>, transform_indices = @transform_5, window_bounds = array<i64: 64, 128>}, {pipeline_mode = #tpu.pipeline_mode<synchronous>, transform_indices = @transform_6, window_bounds = array<i64: 1, 128>}, {pipeline_mode = #tpu.pipeline_mode<synchronous>, transform_indices = @transform_7, window_bounds = array<i64: 128, 256>}, {pipeline_mode = #tpu.pipeline_mode<synchronous>, transform_indices = @transform_8, window_bounds = array<i64: 1, 256>}, {pipeline_mode = #tpu.pipeline_mode<synchronous>, transform_indices = @transform_9, window_bounds = array<i64: 256, 8>}, {pipeline_mode = #tpu.pipeline_mode<synchronous>, transform_indices = @transform_10, window_bounds = array<i64: 1, 8>}, {transform_indices = @transform_11, window_bounds = array<i64: 16, 8>}]} {
    %c0 = arith.constant 0 : index
    %c0_0 = arith.constant 0 : index
    %0 = vector.load %arg1[%c0, %c0_0] : memref<16x16xf32, #tpu.memory_space<vmem>>, vector<16x16xf32>
    %c0_1 = arith.constant 0 : index
    %c0_2 = arith.constant 0 : index
    %1 = vector.load %arg2[%c0_1, %c0_2] : memref<16x32xf32, #tpu.memory_space<vmem>>, vector<16x32xf32>
    %cst = arith.constant dense<0.000000e+00> : vector<16x32xf32>
    %2 = tpu.matmul %0, %1, %cst {dimension_numbers = #tpu.dot_dimension_numbers<[1], [0], [0], [1], [0, 0, 1, 1], [], []>, precision = #tpu.contract_precision<fp32>} : vector<16x16xf32>, vector<16x32xf32>, vector<16x32xf32> -> vector<16x32xf32>
    %c0_3 = arith.constant 0 : index
    %c0_4 = arith.constant 0 : index
    %3 = vector.load %arg3[%c0_3, %c0_4] : memref<1x32xf32, #tpu.memory_space<vmem>>, vector<1x32xf32>
    %4 = vector.broadcast %3 : vector<1x32xf32> to vector<16x32xf32>
    %5 = arith.addf %2, %4 : vector<16x32xf32>
    %cst_5 = arith.constant 0.000000e+00 : f32
    %6 = vector.broadcast %cst_5 : f32 to vector<16x32xf32>
    %7 = arith.maximumf %5, %6 : vector<16x32xf32>
    %c0_6 = arith.constant 0 : index
    %c0_7 = arith.constant 0 : index
    %8 = vector.load %arg4[%c0_6, %c0_7] : memref<32x64xf32, #tpu.memory_space<vmem>>, vector<32x64xf32>
    %cst_8 = arith.constant dense<0.000000e+00> : vector<16x64xf32>
    %9 = tpu.matmul %7, %8, %cst_8 {dimension_numbers = #tpu.dot_dimension_numbers<[1], [0], [0], [1], [0, 0, 1, 1], [], []>, precision = #tpu.contract_precision<fp32>} : vector<16x32xf32>, vector<32x64xf32>, vector<16x64xf32> -> vector<16x64xf32>
    %c0_9 = arith.constant 0 : index
    %c0_10 = arith.constant 0 : index
    %10 = vector.load %arg5[%c0_9, %c0_10] : memref<1x64xf32, #tpu.memory_space<vmem>>, vector<1x64xf32>
    %11 = vector.broadcast %10 : vector<1x64xf32> to vector<16x64xf32>
    %12 = arith.addf %9, %11 : vector<16x64xf32>
    %cst_11 = arith.constant 0.000000e+00 : f32
    %13 = vector.broadcast %cst_11 : f32 to vector<16x64xf32>
    %14 = arith.maximumf %12, %13 : vector<16x64xf32>
    %c0_12 = arith.constant 0 : index
    %c0_13 = arith.constant 0 : index
    %15 = vector.load %arg6[%c0_12, %c0_13] : memref<64x128xf32, #tpu.memory_space<vmem>>, vector<64x128xf32>
    %cst_14 = arith.constant dense<0.000000e+00> : vector<16x128xf32>
    %16 = tpu.matmul %14, %15, %cst_14 {dimension_numbers = #tpu.dot_dimension_numbers<[1], [0], [0], [1], [0, 0, 1, 1], [], []>, precision = #tpu.contract_precision<fp32>} : vector<16x64xf32>, vector<64x128xf32>, vector<16x128xf32> -> vector<16x128xf32>
    %c0_15 = arith.constant 0 : index
    %c0_16 = arith.constant 0 : index
    %17 = vector.load %arg7[%c0_15, %c0_16] : memref<1x128xf32, #tpu.memory_space<vmem>>, vector<1x128xf32>
    %18 = vector.broadcast %17 : vector<1x128xf32> to vector<16x128xf32>
    %19 = arith.addf %16, %18 : vector<16x128xf32>
    %cst_17 = arith.constant 0.000000e+00 : f32
    %20 = vector.broadcast %cst_17 : f32 to vector<16x128xf32>
    %21 = arith.maximumf %19, %20 : vector<16x128xf32>
    %c0_18 = arith.constant 0 : index
    %c0_19 = arith.constant 0 : index
    %22 = vector.load %arg8[%c0_18, %c0_19] : memref<128x256xf32, #tpu.memory_space<vmem>>, vector<128x256xf32>
    %cst_20 = arith.constant dense<0.000000e+00> : vector<16x256xf32>
    %23 = tpu.matmul %21, %22, %cst_20 {dimension_numbers = #tpu.dot_dimension_numbers<[1], [0], [0], [1], [0, 0, 1, 1], [], []>, precision = #tpu.contract_precision<fp32>} : vector<16x128xf32>, vector<128x256xf32>, vector<16x256xf32> -> vector<16x256xf32>
    %c0_21 = arith.constant 0 : index
    %c0_22 = arith.constant 0 : index
    %24 = vector.load %arg9[%c0_21, %c0_22] : memref<1x256xf32, #tpu.memory_space<vmem>>, vector<1x256xf32>
    %25 = vector.broadcast %24 : vector<1x256xf32> to vector<16x256xf32>
    %26 = arith.addf %23, %25 : vector<16x256xf32>
    %cst_23 = arith.constant 0.000000e+00 : f32
    %27 = vector.broadcast %cst_23 : f32 to vector<16x256xf32>
    %28 = arith.maximumf %26, %27 : vector<16x256xf32>
    %c0_24 = arith.constant 0 : index
    %c0_25 = arith.constant 0 : index
    %29 = vector.load %arg10[%c0_24, %c0_25] : memref<256x8xf32, #tpu.memory_space<vmem>>, vector<256x8xf32>
    %cst_26 = arith.constant dense<0.000000e+00> : vector<16x8xf32>
    %30 = tpu.matmul %28, %29, %cst_26 {dimension_numbers = #tpu.dot_dimension_numbers<[1], [0], [0], [1], [0, 0, 1, 1], [], []>, precision = #tpu.contract_precision<fp32>} : vector<16x256xf32>, vector<256x8xf32>, vector<16x8xf32> -> vector<16x8xf32>
    %c0_27 = arith.constant 0 : index
    %c0_28 = arith.constant 0 : index
    %31 = vector.load %arg11[%c0_27, %c0_28] : memref<1x8xf32, #tpu.memory_space<vmem>>, vector<1x8xf32>
    %32 = vector.broadcast %31 : vector<1x8xf32> to vector<16x8xf32>
    %33 = arith.addf %30, %32 : vector<16x8xf32>
    %c0_29 = arith.constant 0 : index
    %c0_30 = arith.constant 0 : index
    %34 = vector.load %arg12[%c0_29, %c0_30] : memref<16x8xf32, #tpu.memory_space<vmem>>, vector<16x8xf32>
    tpu.vector_store %arg12[%c0_29, %c0_30], %33 {strides = array<i32>} : memref<16x8xf32, #tpu.memory_space<vmem>>, vector<16x8xf32>,
    return
  }
  func.func @transform_0(%arg0: i32) -> (i32, i32) {
    %c0_i32 = arith.constant 0 : i32
    %c0_i32_0 = arith.constant 0 : i32
    return %arg0, %c0_i32 : i32, i32
  }
  func.func @transform_1(%arg0: i32) -> (i32, i32) {
    %c0_i32 = arith.constant 0 : i32
    %c0_i32_0 = arith.constant 0 : i32
    %c0_i32_1 = arith.constant 0 : i32
    return %c0_i32, %c0_i32_0 : i32, i32
  }
  func.func @transform_2(%arg0: i32) -> (i32, i32) {
    %c0_i32 = arith.constant 0 : i32
    %c0_i32_0 = arith.constant 0 : i32
    %c0_i32_1 = arith.constant 0 : i32
    return %c0_i32, %c0_i32_0 : i32, i32
  }
  func.func @transform_3(%arg0: i32) -> (i32, i32) {
    %c0_i32 = arith.constant 0 : i32
    %c0_i32_0 = arith.constant 0 : i32
    %c0_i32_1 = arith.constant 0 : i32
    return %c0_i32, %c0_i32_0 : i32, i32
  }
  func.func @transform_4(%arg0: i32) -> (i32, i32) {
    %c0_i32 = arith.constant 0 : i32
    %c0_i32_0 = arith.constant 0 : i32
    %c0_i32_1 = arith.constant 0 : i32
    return %c0_i32, %c0_i32_0 : i32, i32
  }
  func.func @transform_5(%arg0: i32) -> (i32, i32) {
    %c0_i32 = arith.constant 0 : i32
    %c0_i32_0 = arith.constant 0 : i32
    %c0_i32_1 = arith.constant 0 : i32
    return %c0_i32, %c0_i32_0 : i32, i32
  }
  func.func @transform_6(%arg0: i32) -> (i32, i32) {
    %c0_i32 = arith.constant 0 : i32
    %c0_i32_0 = arith.constant 0 : i32
    %c0_i32_1 = arith.constant 0 : i32
    return %c0_i32, %c0_i32_0 : i32, i32
  }
  func.func @transform_7(%arg0: i32) -> (i32, i32) {
    %c0_i32 = arith.constant 0 : i32
    %c0_i32_0 = arith.constant 0 : i32
    %c0_i32_1 = arith.constant 0 : i32
    return %c0_i32, %c0_i32_0 : i32, i32
  }
  func.func @transform_8(%arg0: i32) -> (i32, i32) {
    %c0_i32 = arith.constant 0 : i32
    %c0_i32_0 = arith.constant 0 : i32
    %c0_i32_1 = arith.constant 0 : i32
    return %c0_i32, %c0_i32_0 : i32, i32
  }
  func.func @transform_9(%arg0: i32) -> (i32, i32) {
    %c0_i32 = arith.constant 0 : i32
    %c0_i32_0 = arith.constant 0 : i32
    %c0_i32_1 = arith.constant 0 : i32
    return %c0_i32, %c0_i32_0 : i32, i32
  }
  func.func @transform_10(%arg0: i32) -> (i32, i32) {
    %c0_i32 = arith.constant 0 : i32
    %c0_i32_0 = arith.constant 0 : i32
    %c0_i32_1 = arith.constant 0 : i32
    return %c0_i32, %c0_i32_0 : i32, i32
  }
  func.func @transform_11(%arg0: i32) -> (i32, i32) {
    %c0_i32 = arith.constant 0 : i32
    %c0_i32_0 = arith.constant 0 : i32
    return %arg0, %c0_i32 : i32, i32
  }
}

</mosaic_0001>

<bundles_post_ra>
// kernel: tpu_custom_call.1
= control target key start
LH: loop header
LB: loop body
LE: loop exit
PB: predicated region body
PF: predicated region fallthrough
CT: control target
= control target key end

     0   :  { %16 = vsyncpa [#allocation3], 0  ;;  %s6048_s0 = inlined_call_operand.vmem [shape: f32[16,16], index: 0, kind: input, shape index: {}]   ;;  %s6049_s1 = inlined_call_operand.hbm [shape: f32[16,32], index: 1, kind: input, shape index: {}]   ;;  %s6050_s2 = inlined_call_operand.hbm [shape: f32[1,32], index: 2, kind: input, shape index: {}]   ;;  %s6051_s3 = inlined_call_operand.hbm [shape: f32[32,64], index: 3, kind: input, shape index: {}]   ;;  %s6052_s4 = inlined_call_operand.hbm [shape: f32[1,64], index: 4, kind: input, shape index: {}]   ;;  %s6053_s5 = inlined_call_operand.hbm [shape: f32[64,128], index: 5, kind: input, shape index: {}]   ;;  %s6054_s6 = inlined_call_operand.hbm [shape: f32[1,128], index: 6, kind: input, shape index: {}]   ;;  %s6055_s7 = inlined_call_operand.vmem [shape: f32[128,256], index: 7, kind: input, shape index: {}]   ;;  %s6056_s8 = inlined_call_operand.hbm [shape: f32[1,256], index: 8, kind: input, shape index: {}]   ;;  %s6057_s9 = inlined_call_operand.vmem [shape: f32[256,8], index: 9, kind: input, shape index: {}]   ;;  %s6058_s10 = inlined_call_operand.vmem [shape: f32[1,8], index: 10, kind: input, shape index: {}]   ;;  %s6059_s11 = inlined_call_operand.vmem [shape: f32[16,8], index: 11, kind: output, shape index: {}]  }
   0x1   :  { %17 = vsyncpa [#allocation5], 0 }
   0x2   :  { %18 = vsyncpa [#allocation8], 0 }
   0x3   :  { %19 = vsyncpa [#allocation11], 0  ;;  %s4451_s17 = smov [#allocation4]   ;;  %s4452_s19 = smov [#allocation7]  }
   0x4   :  { %s40_s18 = sshll.u32 %s4451_s17, 4  ;;  %s62_s20 = sshll.u32 %s4452_s19, 4  ;;  %s41_s18 = int_to_ptr.vmem [resolvable:$true] %s40_s18  ;;  %s63_s20 = int_to_ptr.vmem [resolvable:$true] %s62_s20 }
   0x5   :  { %s4311_s21 = scalar_lea.vmem %s41_s18, 16  ;;  %s4315_s22 = scalar_lea.vmem %s41_s18, 32 }
   0x6   :  { %p4312_p0 = scmp.ne.s32.totalorder %s41_s18, %s4311_s21  ;;  %p4316_p1 = scmp.lt.s32.totalorder %s41_s18, %s41_s18 }
   0x7   :  { %p4317_p2 = scmp.lt.s32.totalorder %s4315_s22, %s4311_s21 }
   0x9   :  { %p4318_p3 = por %p4317_p2, %p4316_p1 }
   0xb   :  { %p4319_p4 = pnand %p4318_p3, %p4312_p0 }
   0xd   :  { %4322 = shalt.err (!%p4319_p4)
}
   0xe   :  { %43 = dma.hbm_to_vmem [thread:$0]  %s6050_s2, 16, %s41_s18, [#allocation5]  }
   0xf   :  { %s4331_s25 = scalar_lea.vmem %s63_s20, 16  ;;  %s4335_s26 = scalar_lea.vmem %s63_s20, 32 }
  0x10   :  { %p4332_p5 = scmp.ne.s32.totalorder %s63_s20, %s4331_s25  ;;  %p4336_p6 = scmp.lt.s32.totalorder %s63_s20, %s63_s20 }
  0x11   :  { %p4337_p7 = scmp.lt.s32.totalorder %s4335_s26, %s4331_s25 }
  0x13   :  { %p4338_p8 = por %p4337_p7, %p4336_p6 }
  0x15   :  { %p4339_p9 = pnand %p4338_p8, %p4332_p5 }
  0x17   :  { %4342 = shalt.err (!%p4339_p9)
}
  0x18   :  { %65 = dma.hbm_to_vmem [thread:$0]  %s6052_s4, 16, %s63_s20, [#allocation8]  }
  0x19   :  { %s4453_s29 = smov [#allocation10]   ;;  %s4454_s12 = smov [#allocation2]  }
  0x1a   :  { %s84_s30 = sshll.u32 %s4453_s29, 4  ;;  %s27_s13 = sshll.u32 %s4454_s12, 4  ;;  %s85_s30 = int_to_ptr.vmem [resolvable:$true] %s84_s30  ;;  %s28_s13 = int_to_ptr.vmem [resolvable:$true] %s27_s13 }
  0x1b   :  { %s4351_s14 = scalar_lea.vmem %s85_s30, 16  ;;  %s4355_s2 = scalar_lea.vmem %s85_s30, 32 }
  0x1c   :  { %p4352_p10 = scmp.ne.s32.totalorder %s85_s30, %s4351_s14  ;;  %p4356_p11 = scmp.lt.s32.totalorder %s85_s30, %s85_s30 }
  0x1d   :  { %p4357_p12 = scmp.lt.s32.totalorder %s4355_s2, %s4351_s14 }
  0x1f   :  { %p4358_p13 = por %p4357_p12, %p4356_p11 }
  0x21   :  { %p4359_p0 = pnand %p4358_p13, %p4352_p10 }
  0x23   :  { %4362 = shalt.err (!%p4359_p0)
}
  0x24   :  { %87 = dma.hbm_to_vmem [thread:$0]  %s6054_s6, 16, %s85_s30, [#allocation11]  }
  0x25   :  { %s4371_s17 = scalar_lea.vmem %s28_s13, 256  ;;  %p4376_p2 = scmp.lt.s32.totalorder %s28_s13, %s28_s13 }
  0x26   :  { %p4372_p1 = scmp.ne.s32.totalorder %s28_s13, %s4371_s17  ;;  %p4377_p3 = scmp.lt.s32.totalorder %s4371_s17, %s4371_s17 }
  0x28   :  { %p4378_p4 = por %p4377_p3, %p4376_p2 }
  0x2a   :  { %p4379_p5 = pnand %p4378_p4, %p4372_p1 }
  0x2c   :  { %4382 = shalt.err (!%p4379_p5)
}
  0x2d   :  { %s4455_s4 = smov 128   ;;  %s4456_s18 = smov 8  }
  0x2e   :  { %33 = dma.hbm_to_vmem [thread:$0]  %s6049_s1, 256, %s28_s13, [#allocation3], %s4455_s4, %s4455_s4, %s4456_s18  }
  0x2f   :  { %s4457_s21 = smov [#allocation6]   ;;  %s4458_s23 = smov [#allocation9]  }
  0x30   :  { %s49_s22 = sshll.u32 %s4457_s21, 4  ;;  %s71_s24 = sshll.u32 %s4458_s23, 4  ;;  %s50_s22 = int_to_ptr.vmem [resolvable:$true] %s49_s22  ;;  %s72_s24 = int_to_ptr.vmem [resolvable:$true] %s71_s24 }
  0x31   :  { %s4391_s6 = scalar_lea.vmem %s50_s22, 512  ;;  %p4396_p7 = scmp.lt.s32.totalorder %s50_s22, %s50_s22 }
  0x32   :  { %p4392_p6 = scmp.ne.s32.totalorder %s50_s22, %s4391_s6  ;;  %p4397_p8 = scmp.lt.s32.totalorder %s4391_s6, %s4391_s6 }
  0x34   :  { %p4398_p9 = por %p4397_p8, %p4396_p7 }
  0x36   :  { %p4399_p10 = pnand %p4398_p9, %p4392_p6 }
  0x38   :  { %4402 = shalt.err (!%p4399_p10)
}
  0x39   :  { %55 = dma.hbm_to_vmem [thread:$0]  %s6051_s3, 512, %s50_s22, [#allocation5], %s4455_s4, %s4455_s4, %s4456_s18  }
  0x3a   :  { %s4411_s27 = scalar_lea.vmem %s72_s24, 1024  ;;  %p4416_p12 = scmp.lt.s32.totalorder %s72_s24, %s72_s24 }
  0x3b   :  { %p4412_p11 = scmp.ne.s32.totalorder %s72_s24, %s4411_s27  ;;  %p4417_p13 = scmp.lt.s32.totalorder %s4411_s27, %s4411_s27 }
  0x3d   :  { %p4418_p0 = por %p4417_p13, %p4416_p12 }
  0x3f   :  { %p4419_p1 = pnand %p4418_p0, %p4412_p11 }
  0x41   :  { %4422 = shalt.err (!%p4419_p1)
}
  0x42   :  { %77 = dma.hbm_to_vmem [thread:$0]  %s6053_s5, 1024, %s72_s24, [#allocation8], %s4455_s4, %s4455_s4, %s4456_s18  }
  0x43   :  { %s4459_s29 = smov [#allocation12]  }
  0x44   :  { %s96_s30 = sshll.u32 %s4459_s29, 4  ;;  %s97_s30 = int_to_ptr.vmem [resolvable:$true] %s96_s30 }
  0x45   :  { %s4431_s12 = scalar_lea.vmem %s97_s30, 32  ;;  %p4436_p3 = scmp.lt.s32.totalorder %s97_s30, %s97_s30 }
  0x46   :  { %p4432_p2 = scmp.ne.s32.totalorder %s97_s30, %s4431_s12  ;;  %p4437_p4 = scmp.lt.s32.totalorder %s4431_s12, %s4431_s12 }
  0x48   :  { %p4438_p5 = por %p4437_p4, %p4436_p3 }
  0x4a   :  { %p4439_p6 = pnand %p4438_p5, %p4432_p2 }
  0x4c   :  { %4442 = shalt.err (!%p4439_p6)
}
  0x4d   :  { %99 = dma.hbm_to_vmem [thread:$0]  %s6056_s8, 32, %s97_s30, [#allocation11]  }
  0x4e   :  { %4443 = dma.done.wait [#allocation3], 256  }
  0x4f   :  { %4444 = vsyncadd [#allocation3], 4294967040 }
  0x50   :  { %4445 = dma.done.wait [#allocation5], 528  }
  0x51   :  { %4446 = vsyncadd [#allocation5], 4294966768 }
  0x52   :  { %4447 = dma.done.wait [#allocation8], 1040  }
  0x53   :  { %4448 = vsyncadd [#allocation8], 4294966256 }
  0x54   :  { %4449 = dma.done.wait [#allocation11], 48  }
  0x55   :  { %4450 = vsyncadd [#allocation11], 4294967248  ;;  %vm136_vm0 = vcmask 130048   ;;  %v128_v0 = vld [vmem:[#allocation2 + $0x8] sm:$0xff]  ;;  %v127_v1 = vld [vmem:[#allocation2] sm:$0xff]  ;;  %vm658_vm1 = vcmask 261120  }
  0x56   :  { %v125_v2 = vld [vmem:[%s6048_s0] sm:$0xff]  ;;  %v172_v3 = vand.u32 4294901760, %v128_v0  ;;  %v175_v4 = vand.u32 4294901760, %v127_v1  ;;  %v126_v5 = vld [vmem:[%s6048_s0 + $0x8] sm:$0xff]  ;;  %v647_v35 = vld [vmem:[#allocation6] sm:$0xff]  ;;  %vm1210_vm2 = vcmask 523264  }
  0x57   :  { %v138_v6 = vsel %vm136_vm0, %v125_v2, 0  ;;  %v141_v7 = vsel %vm136_vm0, %v126_v5, 0  ;;  %v650_v26 = vld [vmem:[#allocation6 + $0x18] sm:$0xff]  ;;  %v649_v28 = vld [vmem:[#allocation6 + $0x10] sm:$0xff]  ;;  %v648_v31 = vld [vmem:[#allocation6 + $0x8] sm:$0xff]  ;;  %v4575_v39 = vand.u32 4294901760, %v647_v35 }
  0x58   :  { %v210_v8 = vand.u32 4294901760, %v138_v6  ;;  %4071 = vmatprep.subr.mxu0 %v172_v3  ;;  %v260_v9 = vsub.f32 %v128_v0, %v172_v3  ;;  %v220_v10 = vand.u32 4294901760, %v141_v7  ;;  %v267_v11 = vsub.f32 %v127_v1, %v175_v4  ;;  %v3719_v50 = vld [vmem:[#allocation4] ss:$0 sm:$0xff] }
  0x59   :  { %4072 = vmatpush3.msra.mxu0 %v172_v3  ;;  %v4548_v27 = vand.u32 4294901760, %v650_v26  ;;  %v4553_v30 = vand.u32 4294901760, %v649_v28  ;;  %v4563_v34 = vand.u32 4294901760, %v648_v31  ;;  %v4585_v43 = vsub.f32 %v647_v35, %v4575_v39 }
  0x5a   :  { %v211_v12 = vsub.f32 %v138_v6, %v210_v8  ;;  %4082 = vmatprep.mubr.f32.mxu1 %v210_v8  ;;  %4073 = vmatprep.subr.mxu0 %v175_v4  ;;  %v261_v13 = vand.u32 4294901760, %v260_v9  ;;  %v221_v14 = vsub.f32 %v141_v7, %v220_v10  ;;  %v268_v15 = vand.u32 4294901760, %v267_v11 }
  0x5b   :  { %4074 = vmatpush3.msra.mxu0 %v175_v4  ;;  %v4551_v29 = vsub.f32 %v650_v26, %v4548_v27  ;;  %v4561_v33 = vsub.f32 %v649_v28, %v4553_v30  ;;  %v4573_v38 = vsub.f32 %v648_v31, %v4563_v34  ;;  %v4592_v46 = vand.u32 4294901760, %v4585_v43 }
  0x5c   :  { %v212_v16 = vand.u32 4294901760, %v211_v12  ;;  %v262_v17 = vsub.f32 %v260_v9, %v261_v13  ;;  %v222_v18 = vand.u32 4294901760, %v221_v14  ;;  %v269_v19 = vsub.f32 %v267_v11, %v268_v15  ;;  %4085 = vmatprep.subr.mxu0 %v260_v9 }
  0x5d   :  { %v4558_v32 = vand.u32 4294901760, %v4551_v29  ;;  %v4570_v37 = vand.u32 4294901760, %v4561_v33  ;;  %v4582_v42 = vand.u32 4294901760, %v4573_v38  ;;  %v803_v48 = vsub.f32 %v4585_v43, %v4592_v46 }
  0x5e   :  { %v213_v20 = vsub.f32 %v211_v12, %v212_v16  ;;  %v263_v21 = vand.u32 4294901760, %v262_v17  ;;  %v223_v22 = vsub.f32 %v221_v14, %v222_v18  ;;  %v270_v23 = vand.u32 4294901760, %v269_v19 }
  0x5f   :  { %v782_v36 = vsub.f32 %v4551_v29, %v4558_v32  ;;  %v789_v41 = vsub.f32 %v4561_v33, %v4570_v37  ;;  %v796_v45 = vsub.f32 %v4573_v38, %v4582_v42  ;;  %v804_v49 = vand.u32 4294901760, %v803_v48 }
  0x60   :  { %v214_v24 = vand.u32 4294901760, %v213_v20  ;;  %4078 = vmatprep.subr.mxu1 %v263_v21  ;;  %v224_v25 = vand.u32 4294901760, %v223_v22  ;;  %vm3708_vm3 = vcmask 64512  }
  0x61   :  { %4079 = vmatpush3.msra.mxu1 %v263_v21  ;;  %v783_v40 = vand.u32 4294901760, %v782_v36  ;;  %v790_v44 = vand.u32 4294901760, %v789_v41  ;;  %v797_v47 = vand.u32 4294901760, %v796_v45  ;;  %v1197_v45 = vld [vmem:[#allocation9 + $0x10] sm:$0xff] }
  0x62   :  { %4075 = vmatprep.mubr.f32.mxu0 %v214_v24  ;;  %4080 = vmatprep.subr.mxu1 %v270_v23 }
  0x63   :  { %4076 = vmatmul.mubr.f32.vlgmr.msra.gmra.mxu0 %v224_v25  ;;  %4081 = vmatpush3.msra.mxu1 %v270_v23  ;;  %v1202_v25 = vld [vmem:[#allocation9 + $0x38] sm:$0xff] }
  0x64   :  { %4086 = vmatpush3.msra.mxu0 %v260_v9  ;;  %4083 = vmatmul.mubr.f32.vlgmr.msra.gmra.mxu1 %v220_v10  ;;  %v4628_v26 = vand.u32 4294901760, %v1202_v25 }
  0x65   :  { %4087 = vmatprep.subr.mxu0 %v267_v11  ;;  %4092 = vmatprep.subr.mxu1 %v172_v3 }
  0x66   :  { %4088 = vmatpush3.msra.mxu0 %v267_v11  ;;  %4089 = vmatprep.mubr.f32.mxu0 %v211_v12  ;;  %v4631_v28 = vsub.f32 %v1202_v25, %v4628_v26 }
  0x67   :  { %4093 = vmatpush3.msra.mxu1 %v172_v3  ;;  %4090 = vmatmul.mubr.f32.vlgmr.msra.gmra.mxu0 %v221_v14 }
  0x68   :  { %4094 = vmatprep.subr.mxu1 %v175_v4  ;;  %4099 = vmatprep.subr.mxu0 %v261_v13  ;;  %v4638_v31 = vand.u32 4294901760, %v4631_v28 }
  0x69   :  { %4095 = vmatpush3.msra.mxu1 %v175_v4  ;;  %4096 = vmatprep.mubr.f32.mxu1 %v212_v16 }
  0x6a   :  { %4100 = vmatpush3.msra.mxu0 %v261_v13  ;;  %4097 = vmatmul.mubr.f32.vlgmr.msra.gmra.mxu1 %v222_v18  ;;  %v1330_v35 = vsub.f32 %v4631_v28, %v4638_v31 }
  0x6b   :  { %4101 = vmatprep.subr.mxu0 %v268_v15  ;;  %4106 = vmatprep.subr.mxu1 %v172_v3 }
  0x6c   :  { %4102 = vmatpush3.msra.mxu0 %v268_v15  ;;  %4103 = vmatprep.mubr.f32.mxu0 %v210_v8 }
  0x6d   :  { %4107 = vmatpush3.msra.mxu1 %v172_v3  ;;  %4104 = vmatmul.mubr.f32.vlgmr.msra.gmra.mxu0 %v220_v10 }
  0x6e   :  { %4108 = vmatprep.subr.mxu1 %v175_v4  ;;  %4110 = vmatprep.mubr.f32.mxu1 %v210_v8 }
  0x6f   :  { %4109 = vmatpush3.msra.mxu1 %v175_v4  ;;  %4113 = vmatprep.subr.mxu0 %v4548_v27 }
  0x70   :  { %4111 = vmatmul.mubr.f32.vlgmr.msra.gmra.mxu1 %v220_v10  ;;  %4114 = vmatpush3.msra.mxu0 %v4548_v27 }
  0x71   :  { %4115 = vmatprep.subr.mxu0 %v4553_v30  ;;  %4124 = vmatprep.subr.mxu1 %v783_v40 }
  0x72   :  { %4116 = vmatpush3.msra.mxu0 %v4553_v30  ;;  %4125 = vmatpush3.msra.mxu1 %v783_v40  ;;  %v1331_v40 = vand.u32 4294901760, %v1330_v35 }
  0x73   :  { %4117 = vmatprep.subr.mxu0 %v4563_v34  ;;  %4126 = vmatprep.subr.mxu1 %v790_v44 }
  0x74   :  { %4118 = vmatpush3.msra.mxu0 %v4563_v34  ;;  %4127 = vmatpush3.msra.mxu1 %v790_v44 }
  0x75   :  { %4119 = vmatprep.subr.mxu0 %v4575_v39  ;;  %4128 = vmatprep.subr.mxu1 %v797_v47 }
  0x76   :  { %4120 = vmatpush3.msra.mxu0 %v4575_v39  ;;  %4129 = vmatpush3.msra.mxu1 %v797_v47 }
  0x77   :  { %4135 = vmatprep.subr.mxu0 %v4551_v29  ;;  %4130 = vmatprep.subr.mxu1 %v804_v49 }
  0x78   :  { %4131 = vmatpush3.msra.mxu1 %v804_v49  ;;  %v4676_v49 = vand.u32 4294901760, %v1197_v45 }
  0x79   :  { %4146 = vmatprep.subr.mxu1 %v4548_v27 }
 0x123   :  { %v4077_v51 = vpop.f32.mrf.mxu0 }
 0x124   :  { %v227_v52 = vadd.f32 %v4077_v51, %v3719_v50  ;;  %v4084_v54 = vpop.f32.mrf.mxu1  ;;  %v1196_v51 = vld [vmem:[#allocation9 + $0x8] sm:$0xff] }
 0x125   :  { %v216_v53 = vpop.f32.mrf.mxu0 }
 0x126   :  { %v217_v55 = vadd.f32 %v3719_v50, %v216_v53  ;;  %v314_v56 = vadd.f32 %v4084_v54, %v227_v52  ;;  %v307_v57 = vpop.f32.mrf.mxu1  ;;  %v4685_v54 = vsub.f32 %v1197_v45, %v4676_v49 }
 0x127   :  { %v4091_v59 = vpop.f32.mrf.mxu0 }
 0x128   :  { %v308_v58 = vadd.f32 %v307_v57, %v217_v55  ;;  %v397_v60 = vadd.f32 %v4091_v59, %v314_v56  ;;  %v4687_v55 = vand.u32 4294901760, %v1196_v51  ;;  %v1195_v57 = vld [vmem:[#allocation9] sm:$0xff]  ;;  %v4695_v59 = vand.u32 4294901760, %v4685_v54 }
 0x129   :  { %v389_v61 = vpop.f32.mrf.mxu0 }
 0x12a   :  { %v390_v62 = vadd.f32 %v389_v61, %v308_v58  ;;  %v4098_v63 = vpop.f32.mrf.mxu1  ;;  %v4700_v61 = vand.u32 4294901760, %v1195_v57 }
 0x12b   :  { %v480_v0 = vadd.f32 %v4098_v63, %v397_v60  ;;  %v4698_v60 = vsub.f32 %v1196_v51, %v4687_v55  ;;  %v1365_v63 = vsub.f32 %v4685_v54, %v4695_v59 }
 0x12c   :  { %v471_v1 = vpop.f32.mrf.mxu1 }
 0x12d   :  { %v472_v2 = vadd.f32 %v471_v1, %v390_v62  ;;  %v4105_v3 = vpop.f32.mrf.mxu0  ;;  %v4712_v1 = vsub.f32 %v1195_v57, %v4700_v61 }
 0x12e   :  { %v563_v4 = vadd.f32 %v4105_v3, %v480_v0  ;;  %v4709_v0 = vand.u32 4294901760, %v4698_v60  ;;  %v1366_v3 = vand.u32 4294901760, %v1365_v63 }
 0x12f   :  { %v556_v5 = vpop.f32.mrf.mxu0 }
 0x130   :  { %v4112_v6 = vpop.f32.mrf.mxu1  ;;  %v557_v7 = vadd.f32 %v556_v5, %v472_v2  ;;  %v4719_v5 = vand.u32 4294901760, %v4712_v1 }
 0x131   :  { %v642_v8 = vadd.f32 %v4112_v6, %v563_v4  ;;  %v1372_v4 = vsub.f32 %v4698_v60, %v4709_v0 }
 0x132   :  { %v635_v9 = vpop.f32.mrf.mxu1 }
 0x133   :  { %v646_v10 = vmax.f32 %v642_v8, 0.0  ;;  %v636_v11 = vadd.f32 %v635_v9, %v557_v7  ;;  %v1373_v6 = vand.u32 4294901760, %v1372_v4  ;;  %v1379_v7 = vsub.f32 %v4712_v1, %v4719_v5 }
 0x135   :  { %v663_v12 = vsel %vm658_vm1, %v646_v10, 0  ;;  %v645_v13 = vmax.f32 %v636_v11, 0.0  ;;  %v1380_v8 = vand.u32 4294901760, %v1379_v7  ;;  %v3720_v10 = vld [vmem:[#allocation7] ss:$0 sm:$0xff] }
 0x136   :  { %v744_v14 = vand.u32 4294901760, %v663_v12 }
 0x137   :  { %v660_v15 = vsel %vm658_vm1, %v645_v13, 0 }
 0x138   :  { %v745_v16 = vsub.f32 %v663_v12, %v744_v14  ;;  %v734_v17 = vand.u32 4294901760, %v660_v15 }
 0x13a   :  { %v735_v18 = vsub.f32 %v660_v15, %v734_v17  ;;  %4132 = vmatprep.mubr.f32.mxu1 %v734_v17  ;;  %v746_v19 = vand.u32 4294901760, %v745_v16 }
 0x13b   :  { %4133 = vmatmul.mubr.f32.vlgmr.msra.gmra.mxu1 %v744_v14 }
 0x13c   :  { %4147 = vmatpush3.msra.mxu1 %v4548_v27  ;;  %v736_v20 = vand.u32 4294901760, %v735_v18  ;;  %v747_v22 = vsub.f32 %v745_v16, %v746_v19 }
 0x13d   :  { %4148 = vmatprep.subr.mxu1 %v4553_v30 }
 0x13e   :  { %4149 = vmatpush3.msra.mxu1 %v4553_v30  ;;  %4154 = vmatprep.mubr.f32.mxu1 %v736_v20  ;;  %v737_v21 = vsub.f32 %v735_v18, %v736_v20  ;;  %v748_v24 = vand.u32 4294901760, %v747_v22 }
 0x13f   :  { %4150 = vmatprep.subr.mxu1 %v4563_v34 }
 0x140   :  { %4151 = vmatpush3.msra.mxu1 %v4563_v34  ;;  %v738_v23 = vand.u32 4294901760, %v737_v21 }
 0x141   :  { %4152 = vmatprep.subr.mxu1 %v4575_v39 }
 0x142   :  { %4153 = vmatpush3.msra.mxu1 %v4575_v39  ;;  %4121 = vmatprep.mubr.f32.mxu0 %v738_v23 }
 0x143   :  { %4155 = vmatmul.mubr.f32.vlgmr.msra.gmra.mxu1 %v746_v19  ;;  %4168 = vmatprep.subr.mxu1 %v4548_v27 }
 0x144   :  { %4122 = vmatmul.mubr.f32.vlgmr.msra.gmra.mxu0 %v748_v24  ;;  %4169 = vmatpush3.msra.mxu1 %v4548_v27  ;;  %v1201_v27 = vld [vmem:[#allocation9 + $0x30] sm:$0xff] }
 0x145   :  { %4136 = vmatpush3.msra.mxu0 %v4551_v29  ;;  %4176 = vmatprep.mubr.f32.mxu1 %v734_v17  ;;  %v4633_v29 = vand.u32 4294901760, %v1201_v27 }
 0x146   :  { %4137 = vmatprep.subr.mxu0 %v4561_v33  ;;  %4143 = vmatprep.mubr.f32.mxu0 %v735_v18 }
 0x147   :  { %4170 = vmatprep.subr.mxu1 %v4553_v30  ;;  %4138 = vmatpush3.msra.mxu0 %v4561_v33 }
 0x148   :  { %4171 = vmatpush3.msra.mxu1 %v4553_v30  ;;  %4139 = vmatprep.subr.mxu0 %v4573_v38  ;;  %v1200_v30 = vld [vmem:[#allocation9 + $0x28] sm:$0xff] }
 0x149   :  { %4172 = vmatprep.subr.mxu1 %v4563_v34  ;;  %4140 = vmatpush3.msra.mxu0 %v4573_v38  ;;  %v4643_v33 = vand.u32 4294901760, %v1200_v30 }
 0x14a   :  { %4173 = vmatpush3.msra.mxu1 %v4563_v34  ;;  %4141 = vmatprep.subr.mxu0 %v4585_v43  ;;  %v1199_v34 = vld [vmem:[#allocation9 + $0x20] sm:$0xff] }
 0x14b   :  { %4174 = vmatprep.subr.mxu1 %v4575_v39  ;;  %4142 = vmatpush3.msra.mxu0 %v4585_v43  ;;  %v4655_v38 = vand.u32 4294901760, %v1199_v34 }
 0x14c   :  { %4175 = vmatpush3.msra.mxu1 %v4575_v39  ;;  %4144 = vmatmul.mubr.f32.vlgmr.msra.gmra.mxu0 %v745_v16  ;;  %v1198_v39 = vld [vmem:[#allocation9 + $0x18] sm:$0xff] }
 0x14d   :  { %4157 = vmatprep.subr.mxu0 %v4558_v32  ;;  %4177 = vmatmul.mubr.f32.vlgmr.msra.gmra.mxu1 %v744_v14  ;;  %v4665_v43 = vsub.f32 %v1199_v34, %v4655_v38  ;;  %v4668_v44 = vand.u32 4294901760, %v1198_v39 }
 0x14e   :  { %4158 = vmatpush3.msra.mxu0 %v4558_v32  ;;  %4165 = vmatprep.mubr.f32.mxu0 %v734_v17  ;;  %v4641_v32 = vsub.f32 %v1201_v27, %v4633_v29 }
 0x14f   :  { %4159 = vmatprep.subr.mxu0 %v4570_v37  ;;  %4198 = vmatprep.subr.mxu1 %v1331_v40  ;;  %v4674_v48 = vand.u32 4294901760, %v4665_v43  ;;  %v4679_v50 = vsub.f32 %v1198_v39, %v4668_v44 }
 0x150   :  { %4160 = vmatpush3.msra.mxu0 %v4570_v37  ;;  %v4650_v36 = vand.u32 4294901760, %v4641_v32  ;;  %v4653_v37 = vsub.f32 %v1200_v30, %v4643_v33  ;;  %4199 = vmatpush3.msra.mxu1 %v1331_v40 }
 0x151   :  { %4161 = vmatprep.subr.mxu0 %v4582_v42  ;;  %v1351_v53 = vsub.f32 %v4665_v43, %v4674_v48  ;;  %v4691_v56 = vand.u32 4294901760, %v4679_v50 }
 0x152   :  { %4162 = vmatpush3.msra.mxu0 %v4582_v42  ;;  %v1337_v41 = vsub.f32 %v4641_v32, %v4650_v36  ;;  %v4662_v42 = vand.u32 4294901760, %v4653_v37 }
 0x153   :  { %4163 = vmatprep.subr.mxu0 %v4592_v46  ;;  %v1352_v58 = vand.u32 4294901760, %v1351_v53  ;;  %v1358_v62 = vsub.f32 %v4679_v50, %v4691_v56 }
 0x154   :  { %4164 = vmatpush3.msra.mxu0 %v4592_v46  ;;  %v1338_v46 = vand.u32 4294901760, %v1337_v41  ;;  %v1344_v47 = vsub.f32 %v4653_v37, %v4662_v42 }
 0x155   :  { %4166 = vmatmul.mubr.f32.vlgmr.msra.gmra.mxu0 %v744_v14  ;;  %4179 = vmatprep.subr.mxu0 %v4628_v26  ;;  %v1359_v2 = vand.u32 4294901760, %v1358_v62 }
 0x156   :  { %4180 = vmatpush3.msra.mxu0 %v4628_v26  ;;  %4200 = vmatprep.subr.mxu1 %v1338_v46  ;;  %v1345_v52 = vand.u32 4294901760, %v1344_v47 }
 0x157   :  { %4181 = vmatprep.subr.mxu0 %v4633_v29  ;;  %4201 = vmatpush3.msra.mxu1 %v1338_v46 }
 0x158   :  { %4182 = vmatpush3.msra.mxu0 %v4633_v29  ;;  %4202 = vmatprep.subr.mxu1 %v1345_v52 }
 0x159   :  { %4183 = vmatprep.subr.mxu0 %v4643_v33  ;;  %4203 = vmatpush3.msra.mxu1 %v1345_v52 }
 0x15a   :  { %4184 = vmatpush3.msra.mxu0 %v4643_v33  ;;  %4204 = vmatprep.subr.mxu1 %v1352_v58 }
 0x15b   :  { %4185 = vmatprep.subr.mxu0 %v4655_v38  ;;  %4205 = vmatpush3.msra.mxu1 %v1352_v58 }
 0x15c   :  { %4186 = vmatpush3.msra.mxu0 %v4655_v38  ;;  %4206 = vmatprep.subr.mxu1 %v1359_v2 }
 0x15d   :  { %4187 = vmatprep.subr.mxu0 %v4668_v44  ;;  %4207 = vmatpush3.msra.mxu1 %v1359_v2 }
 0x15e   :  { %4188 = vmatpush3.msra.mxu0 %v4668_v44  ;;  %4208 = vmatprep.subr.mxu1 %v1366_v3 }
 0x15f   :  { %4189 = vmatprep.subr.mxu0 %v4676_v49  ;;  %4209 = vmatpush3.msra.mxu1 %v1366_v3 }
 0x160   :  { %4190 = vmatpush3.msra.mxu0 %v4676_v49  ;;  %4210 = vmatprep.subr.mxu1 %v1373_v6 }
 0x161   :  { %4191 = vmatprep.subr.mxu0 %v4687_v55  ;;  %4211 = vmatpush3.msra.mxu1 %v1373_v6 }
 0x162   :  { %4192 = vmatpush3.msra.mxu0 %v4687_v55  ;;  %4212 = vmatprep.subr.mxu1 %v1380_v8 }
 0x163   :  { %4193 = vmatprep.subr.mxu0 %v4700_v61  ;;  %4213 = vmatpush3.msra.mxu1 %v1380_v8 }
 0x164   :  { %4194 = vmatpush3.msra.mxu0 %v4700_v61  ;;  %4236 = vmatprep.subr.mxu1 %v4628_v26 }
 0x165   :  { %4217 = vmatprep.subr.mxu0 %v4631_v28 }
 0x1fb   :  { %v4134_v11 = vpop.f32.mrf.mxu1 }
 0x1fd   :  { %v841_v16 = vpop.f32.mrf.mxu1 }
 0x203   :  { %v4156_v18 = vpop.f32.mrf.mxu1 }
 0x204   :  { %v4123_v9 = vpop.f32.mrf.mxu0 }
 0x205   :  { %v751_v13 = vadd.f32 %v4123_v9, %v3720_v10  ;;  %v1011_v23 = vpop.f32.mrf.mxu1 }
 0x206   :  { %v740_v12 = vpop.f32.mrf.mxu0 }
 0x207   :  { %v741_v14 = vadd.f32 %v3720_v10, %v740_v12  ;;  %v848_v17 = vadd.f32 %v4134_v11, %v751_v13  ;;  %v1822_v12 = vld [vmem:[%s6055_s7 + $0xb8] sm:$0xff] }
 0x209   :  { %v842_v21 = vadd.f32 %v841_v16, %v741_v14 }
 0x20c   :  { %v4145_v15 = vpop.f32.mrf.mxu0 }
 0x20d   :  { %v935_v20 = vadd.f32 %v4145_v15, %v848_v17  ;;  %v4178_v25 = vpop.f32.mrf.mxu1  ;;  %v1821_v17 = vld [vmem:[%s6055_s7 + $0xb0] sm:$0xff] }
 0x20e   :  { %v927_v19 = vpop.f32.mrf.mxu0 }
 0x20f   :  { %v928_v22 = vadd.f32 %v927_v19, %v842_v21  ;;  %v1020_v24 = vadd.f32 %v4156_v18, %v935_v20  ;;  %v1183_v41 = vpop.f32.mrf.mxu1 }
 0x211   :  { %v1012_v34 = vadd.f32 %v1011_v23, %v928_v22  ;;  %v1820_v22 = vld [vmem:[%s6055_s7 + $0xa8] sm:$0xff] }
 0x215   :  { %v4167_v27 = vpop.f32.mrf.mxu0 }
 0x216   :  { %v1109_v30 = vadd.f32 %v4167_v27, %v1020_v24  ;;  %v4897_v27 = vand.u32 4294901760, %v1822_v12 }
 0x217   :  { %v1102_v35 = vpop.f32.mrf.mxu0 }
 0x218   :  { %v1190_v39 = vadd.f32 %v4178_v25, %v1109_v30  ;;  %v1103_v40 = vadd.f32 %v1102_v35, %v1012_v34  ;;  %v1819_v30 = vld [vmem:[%s6055_s7 + $0xa0] sm:$0xff] }
 0x21a   :  { %v1194_v45 = vmax.f32 %v1190_v39, 0.0  ;;  %v1184_v46 = vadd.f32 %v1183_v41, %v1103_v40  ;;  %v4906_v40 = vand.u32 4294901760, %v1821_v17  ;;  %v1818_v41 = vld [vmem:[%s6055_s7 + $0x98] sm:$0xff] }
 0x21c   :  { %v1215_v47 = vsel %vm1210_vm2, %v1194_v45, 0  ;;  %v1193_v51 = vmax.f32 %v1184_v46, 0.0 }
 0x21d   :  { %v4726_v52 = vand.u32 4294901760, %v1215_v47 }
 0x21e   :  { %v1212_v53 = vsel %vm1210_vm2, %v1193_v51, 0  ;;  %v4917_v51 = vand.u32 4294901760, %v1820_v22 }
 0x21f   :  { %v1301_v57 = vsub.f32 %v1215_v47, %v4726_v52  ;;  %v1290_v58 = vand.u32 4294901760, %v1212_v53  ;;  %v4915_v47 = vsub.f32 %v1822_v12, %v4897_v27 }
 0x221   :  { %v1291_v62 = vsub.f32 %v1212_v53, %v1290_v58  ;;  %4214 = vmatprep.mubr.f32.mxu1 %v1290_v58  ;;  %v1302_v63 = vand.u32 4294901760, %v1301_v57 }
 0x222   :  { %4215 = vmatmul.mubr.f32.vlgmr.msra.gmra.mxu1 %v4726_v52 }
 0x223   :  { %4237 = vmatpush3.msra.mxu1 %v4628_v26  ;;  %v1292_v2 = vand.u32 4294901760, %v1291_v62  ;;  %v1303_v3 = vsub.f32 %v1301_v57, %v1302_v63 }
 0x224   :  { %4238 = vmatprep.subr.mxu1 %v4633_v29 }
 0x225   :  { %4239 = vmatpush3.msra.mxu1 %v4633_v29  ;;  %4252 = vmatprep.mubr.f32.mxu1 %v1292_v2  ;;  %v1293_v4 = vsub.f32 %v1291_v62, %v1292_v2  ;;  %v1304_v7 = vand.u32 4294901760, %v1303_v3  ;;  %v6067_v3 = vand.u32 4294901760, %v4915_v47 }
 0x226   :  { %4240 = vmatprep.subr.mxu1 %v4643_v33 }
 0x227   :  { %4241 = vmatpush3.msra.mxu1 %v4643_v33  ;;  %v1294_v6 = vand.u32 4294901760, %v1293_v4  ;;  %v4937_v4 = vsub.f32 %v1820_v22, %v4917_v51 }
 0x228   :  { %4242 = vmatprep.subr.mxu1 %v4655_v38 }
 0x229   :  { %4243 = vmatpush3.msra.mxu1 %v4655_v38  ;;  %4195 = vmatprep.mubr.f32.mxu0 %v1294_v6  ;;  %v4939_v6 = vand.u32 4294901760, %v1818_v41 }
 0x22a   :  { %4244 = vmatprep.subr.mxu1 %v4668_v44  ;;  %4196 = vmatmul.mubr.f32.vlgmr.msra.gmra.mxu0 %v1304_v7  ;;  %v1815_v7 = vld [vmem:[%s6055_s7 + $0x80] sm:$0xff] }
 0x22b   :  { %4218 = vmatpush3.msra.mxu0 %v4631_v28  ;;  %4245 = vmatpush3.msra.mxu1 %v4668_v44 }
 0x22c   :  { %4219 = vmatprep.subr.mxu0 %v4641_v32  ;;  %4233 = vmatprep.mubr.f32.mxu0 %v1291_v62  ;;  %v4929_v62 = vand.u32 4294901760, %v1819_v30 }
 0x22d   :  { %4246 = vmatprep.subr.mxu1 %v4676_v49  ;;  %4220 = vmatpush3.msra.mxu0 %v4641_v32  ;;  %v1828_v32 = vld [vmem:[%s6055_s7 + $0xe8] sm:$0xff] }
 0x22e   :  { %4247 = vmatpush3.msra.mxu1 %v4676_v49  ;;  %4221 = vmatprep.subr.mxu0 %v4653_v37 }
 0x22f   :  { %4248 = vmatprep.subr.mxu1 %v4687_v55  ;;  %4222 = vmatpush3.msra.mxu0 %v4653_v37  ;;  %v1827_v37 = vld [vmem:[%s6055_s7 + $0xe0] sm:$0xff] }
 0x230   :  { %4249 = vmatpush3.msra.mxu1 %v4687_v55  ;;  %4223 = vmatprep.subr.mxu0 %v4665_v43 }
 0x231   :  { %4250 = vmatprep.subr.mxu1 %v4700_v61  ;;  %4224 = vmatpush3.msra.mxu0 %v4665_v43  ;;  %v1826_v43 = vld [vmem:[%s6055_s7 + $0xd8] sm:$0xff] }
 0x232   :  { %4251 = vmatpush3.msra.mxu1 %v4700_v61  ;;  %4225 = vmatprep.subr.mxu0 %v4679_v50 }
 0x233   :  { %4253 = vmatmul.mubr.f32.vlgmr.msra.gmra.mxu1 %v1302_v63  ;;  %4274 = vmatprep.subr.mxu1 %v4628_v26  ;;  %v1816_v63 = vld [vmem:[%s6055_s7 + $0x88] sm:$0xff] }
 0x234   :  { %4226 = vmatpush3.msra.mxu0 %v4679_v50  ;;  %4275 = vmatpush3.msra.mxu1 %v4628_v26  ;;  %v1830_v26 = vld [vmem:[%s6055_s7 + $0xf8] sm:$0xff]  ;;  %v1825_v50 = vld [vmem:[%s6055_s7 + $0xd0] sm:$0xff] }
 0x235   :  { %4290 = vmatprep.mubr.f32.mxu1 %v1290_v58  ;;  %4227 = vmatprep.subr.mxu0 %v4685_v54  ;;  %v4797_v28 = vand.u32 4294901760, %v1830_v26 }
 0x236   :  { %4276 = vmatprep.subr.mxu1 %v4633_v29  ;;  %4228 = vmatpush3.msra.mxu0 %v4685_v54 }
 0x237   :  { %4277 = vmatpush3.msra.mxu1 %v4633_v29  ;;  %4229 = vmatprep.subr.mxu0 %v4698_v60  ;;  %6251 = vst [vmem:[#allocation17_spill] sm:$0xff] %v4797_v28  ;;  %v1829_v29 = vld [vmem:[%s6055_s7 + $0xf0] sm:$0xff] }
 0x238   :  { %4278 = vmatprep.subr.mxu1 %v4643_v33  ;;  %4230 = vmatpush3.msra.mxu0 %v4698_v60 }
 0x239   :  { %4279 = vmatpush3.msra.mxu1 %v4643_v33  ;;  %4231 = vmatprep.subr.mxu0 %v4712_v1  ;;  %v4808_v33 = vsub.f32 %v1830_v26, %v4797_v28 }
 0x23a   :  { %4280 = vmatprep.subr.mxu1 %v4655_v38  ;;  %4232 = vmatpush3.msra.mxu0 %v4712_v1 }
 0x23b   :  { %4281 = vmatpush3.msra.mxu1 %v4655_v38  ;;  %4234 = vmatmul.mubr.f32.vlgmr.msra.gmra.mxu0 %v1301_v57  ;;  %6252 = vst [vmem:[#allocation18_spill] sm:$0xff] %v4808_v33 }
 0x23c   :  { %4255 = vmatprep.subr.mxu0 %v4638_v31  ;;  %4282 = vmatprep.subr.mxu1 %v4668_v44 }
 0x23d   :  { %4256 = vmatpush3.msra.mxu0 %v4638_v31  ;;  %4271 = vmatprep.mubr.f32.mxu0 %v1290_v58  ;;  %v4802_v31 = vand.u32 4294901760, %v1829_v29  ;;  %v4927_v58 = vsub.f32 %v1821_v17, %v4906_v40 }
 0x23e   :  { %4283 = vmatpush3.msra.mxu1 %v4668_v44  ;;  %4257 = vmatprep.subr.mxu0 %v4650_v36  ;;  %v6079_v44 = vand.u32 4294901760, %v4808_v33 }
 0x23f   :  { %4284 = vmatprep.subr.mxu1 %v4676_v49  ;;  %4258 = vmatpush3.msra.mxu0 %v4650_v36  ;;  %v4810_v36 = vand.u32 4294901760, %v1828_v32  ;;  %v4817_v38 = vsub.f32 %v1829_v29, %v4802_v31  ;;  %v6066_v29 = vand.u32 4294901760, %v4927_v58 }
 0x240   :  { %4285 = vmatpush3.msra.mxu1 %v4676_v49  ;;  %4259 = vmatprep.subr.mxu0 %v4662_v42  ;;  %v4829_v49 = vand.u32 4294901760, %v1826_v43  ;;  %v1965_v60 = vsub.f32 %v4808_v33, %v6079_v44 }
 0x241   :  { %4286 = vmatprep.subr.mxu1 %v4687_v55  ;;  %4260 = vmatpush3.msra.mxu0 %v4662_v42  ;;  %v4819_v42 = vand.u32 4294901760, %v1827_v37  ;;  %v6078_v54 = vand.u32 4294901760, %v4817_v38 }
 0x242   :  { %4287 = vmatpush3.msra.mxu1 %v4687_v55  ;;  %4261 = vmatprep.subr.mxu0 %v4674_v48  ;;  %v1966_v13 = vand.u32 4294901760, %v1965_v60  ;;  %v4959_v60 = vand.u32 4294901760, %v1816_v63 }
 0x243   :  { %4288 = vmatprep.subr.mxu1 %v4700_v61  ;;  %4262 = vmatpush3.msra.mxu0 %v4674_v48  ;;  %v4827_v48 = vsub.f32 %v1828_v32, %v4810_v36  ;;  %v4837_v55 = vsub.f32 %v1827_v37, %v4819_v42  ;;  %v1971_v8 = vsub.f32 %v4817_v38, %v6078_v54 }
 0x244   :  { %4289 = vmatpush3.msra.mxu1 %v4700_v61  ;;  %4263 = vmatprep.subr.mxu0 %v4691_v56  ;;  %v4947_v32 = vsub.f32 %v1819_v30, %v4929_v62  ;;  %v4980_v22 = vsub.f32 %v1816_v63, %v4959_v60 }
 0x245   :  { %4291 = vmatmul.mubr.f32.vlgmr.msra.gmra.mxu1 %v4726_v52  ;;  %4264 = vmatpush3.msra.mxu0 %v4691_v56  ;;  %v4839_v56 = vand.u32 4294901760, %v1825_v50  ;;  %v6076_v61 = vand.u32 4294901760, %v4827_v48  ;;  %v6075_v9 = vand.u32 4294901760, %v4837_v55  ;;  %v1972_v18 = vand.u32 4294901760, %v1971_v8 }
 0x246   :  { %4265 = vmatprep.subr.mxu0 %v4695_v59  ;;  %1967 = vmatprep.subr.mxu1 %v1966_v13  ;;  %v6063_v8 = vand.u32 4294901760, %v4947_v32  ;;  %v4969_v13 = vand.u32 4294901760, %v1815_v7 }
 0x247   :  { %4266 = vmatpush3.msra.mxu0 %v4695_v59  ;;  %v1824_v59 = vld [vmem:[%s6055_s7 + $0xc8] sm:$0xff]  ;;  %v4863_v10 = vsub.f32 %v1825_v50, %v4839_v56  ;;  %v1977_v14 = vsub.f32 %v4827_v48, %v6076_v61  ;;  %v1983_v19 = vsub.f32 %v4837_v55, %v6075_v9  ;;  %1973 = vmatpush1.msra.mxu1 %v1972_v18  ;;  %v6065_v50 = vand.u32 4294901760, %v4937_v4 }
 0x248   :  { %4267 = vmatprep.subr.mxu0 %v4709_v0  ;;  %v4852_v1 = vand.u32 4294901760, %v1824_v59  ;;  %v2031_v30 = vsub.f32 %v4947_v32, %v6063_v8 }
 0x249   :  { %4268 = vmatpush3.msra.mxu0 %v4709_v0  ;;  %v4850_v0 = vsub.f32 %v1826_v43, %v4829_v49  ;;  %v6072_v20 = vand.u32 4294901760, %v4863_v10  ;;  %v1978_v23 = vand.u32 4294901760, %v1977_v14  ;;  %v1984_v34 = vand.u32 4294901760, %v1983_v19  ;;  %v1814_v14 = vld [vmem:[%s6055_s7 + $0x78] sm:$0xff] }
 0x24a   :  { %4269 = vmatprep.subr.mxu0 %v4719_v5  ;;  %v4876_v16 = vsub.f32 %v1824_v59, %v4852_v1  ;;  %v2013_v43 = vsub.f32 %v4915_v47, %v6067_v3  ;;  %v4957_v59 = vsub.f32 %v1818_v41, %v4939_v6  ;;  %v2025_v18 = vsub.f32 %v4937_v4, %v6065_v50  ;;  %v1812_v41 = vld [vmem:[%s6055_s7 + $0x68] sm:$0xff] }
 0x24b   :  { %4270 = vmatpush3.msra.mxu0 %v4719_v5  ;;  %v1823_v5 = vld [vmem:[%s6055_s7 + $0xc0] sm:$0xff]  ;;  %v6073_v15 = vand.u32 4294901760, %v4850_v0  ;;  %v1995_v35 = vsub.f32 %v4863_v10, %v6072_v20  ;;  %1979 = vmatprep.subr.mxu1 %v1978_v23  ;;  %v1813_v23 = vld [vmem:[%s6055_s7 + $0x70] sm:$0xff]  ;;  %v2032_v63 = vand.u32 4294901760, %v2031_v30 }
 0x24c   :  { %4272 = vmatmul.mubr.f32.vlgmr.msra.gmra.mxu0 %v4726_v52  ;;  %1844 = vmatprep.subr.mxu0 %v4797_v28  ;;  %v4865_v11 = vand.u32 4294901760, %v1823_v5  ;;  %v6071_v25 = vand.u32 4294901760, %v4876_v16  ;;  %v1817_v52 = vld [vmem:[%s6055_s7 + $0x90] sm:$0xff]  ;;  %v2014_v17 = vand.u32 4294901760, %v2013_v43  ;;  %v6062_v19 = vand.u32 4294901760, %v4957_v59  ;;  %v1810_v43 = vld [vmem:[%s6055_s7 + $0x58] sm:$0xff] }
 0x24d   :  { %1846 = vmatpush1.msra.mxu0 %v4802_v31  ;;  %v1989_v24 = vsub.f32 %v4850_v0, %v6073_v15  ;;  %1985 = vmatpush1.msra.mxu1 %v1984_v34  ;;  %v1996_v53 = vand.u32 4294901760, %v1995_v35  ;;  %v4949_v37 = vand.u32 4294901760, %v1817_v52  ;;  %v4991_v35 = vsub.f32 %v1815_v7, %v4969_v13  ;;  %v1809_v30 = vld [vmem:[%s6055_s7 + $0x50] sm:$0xff] }
 0x24e   :  { %1848 = vmatprep.subr.mxu0 %v4810_v36  ;;  %v4887_v21 = vsub.f32 %v1823_v5, %v4865_v11  ;;  %v2001_v46 = vsub.f32 %v4876_v16, %v6071_v25  ;;  %v2019_v5 = vsub.f32 %v4927_v58, %v6066_v29  ;;  %v5043_v8 = vand.u32 4294901760, %v1810_v43 }
 0x24f   :  { %1850 = vmatpush1.msra.mxu0 %v4819_v42  ;;  %v1990_v45 = vand.u32 4294901760, %v1989_v24  ;;  %v4967_v12 = vsub.f32 %v1817_v52, %v4949_v37  ;;  %v6061_v52 = vand.u32 4294901760, %v4980_v22  ;;  %v6064_v7 = vand.u32 4294901760, %v4991_v35 }
 0x250   :  { %1852 = vmatprep.subr.mxu0 %v4829_v49  ;;  %v6069_v39 = vand.u32 4294901760, %v4887_v21  ;;  %v2002_v2 = vand.u32 4294901760, %v2001_v46  ;;  %v2020_v24 = vand.u32 4294901760, %v2019_v5  ;;  %v2037_v46 = vsub.f32 %v4957_v59, %v6062_v19 }
 0x251   :  { %1854 = vmatpush1.msra.mxu0 %v4839_v56  ;;  %1991 = vmatprep.subr.mxu1 %v1990_v45  ;;  %v6060_v34 = vand.u32 4294901760, %v4967_v12  ;;  %v2026_v45 = vand.u32 4294901760, %v2025_v18  ;;  %v5061_v3 = vsub.f32 %v1810_v43, %v5043_v8  ;;  %v1806_v43 = vld [vmem:[%s6055_s7 + $0x38] sm:$0xff] }
 0x252   :  { %1856 = vmatprep.subr.mxu0 %v4852_v1  ;;  %v2007_v57 = vsub.f32 %v4887_v21, %v6069_v39  ;;  %1997 = vmatpush1.msra.mxu1 %v1996_v53  ;;  %v5001_v53 = vand.u32 4294901760, %v1814_v14  ;;  %v2038_v5 = vand.u32 4294901760, %v2037_v46 }
 0x253   :  { %1858 = vmatpush1.msra.mxu0 %v4865_v11  ;;  %2003 = vmatprep.subr.mxu1 %v2002_v2  ;;  %v2043_v2 = vsub.f32 %v4967_v12, %v6060_v34  ;;  %6256 = vst [vmem:[#allocation22_spill] sm:$0xff] %v5061_v3 }
 0x254   :  { %1860 = vmatprep.subr.mxu0 %v4897_v27  ;;  %v2008_v26 = vand.u32 4294901760, %v2007_v57  ;;  %v1811_v57 = vld [vmem:[%s6055_s7 + $0x60] sm:$0xff]  ;;  %v5019_v18 = vsub.f32 %v1814_v14, %v5001_v53  ;;  %v1808_v14 = vld [vmem:[%s6055_s7 + $0x48] sm:$0xff] }
 0x255   :  { %1862 = vmatpush1.msra.mxu0 %v4906_v40  ;;  %v2044_v34 = vand.u32 4294901760, %v2043_v2 }
 0x256   :  { %1864 = vmatprep.subr.mxu0 %v4917_v51  ;;  %2009 = vmatpush1.msra.mxu1 %v2008_v26  ;;  %v5010_v26 = vand.u32 4294901760, %v1813_v23 }
 0x257   :  { %1866 = vmatpush1.msra.mxu0 %v4929_v62  ;;  %2015 = vmatprep.subr.mxu1 %v2014_v17  ;;  %v2049_v17 = vsub.f32 %v4980_v22, %v6061_v52  ;;  %v5033_v52 = vand.u32 4294901760, %v1811_v57 }
 0x258   :  { %1868 = vmatprep.subr.mxu0 %v4939_v6  ;;  %2021 = vmatpush1.msra.mxu1 %v2020_v24  ;;  %v5021_v24 = vand.u32 4294901760, %v1812_v41  ;;  %v5031_v46 = vsub.f32 %v1813_v23, %v5010_v26  ;;  %v1807_v23 = vld [vmem:[%s6055_s7 + $0x40] sm:$0xff] }
 0x259   :  { %1870 = vmatpush1.msra.mxu0 %v4949_v37  ;;  %2027 = vmatprep.subr.mxu1 %v2026_v45  ;;  %v2055_v45 = vsub.f32 %v4991_v35, %v6064_v7  ;;  %v2050_v19 = vand.u32 4294901760, %v2049_v17  ;;  %v5053_v17 = vand.u32 4294901760, %v1809_v30 }
 0x25a   :  { %1872 = vmatprep.subr.mxu0 %v4959_v60  ;;  %2033 = vmatpush1.msra.mxu1 %v2032_v63  ;;  %6253 = vst [vmem:[#allocation19_spill] sm:$0xff] %v5031_v46  ;;  %v6068_v63 = vand.u32 4294901760, %v5019_v18  ;;  %v5041_v2 = vsub.f32 %v1812_v41, %v5021_v24  ;;  %v6070_v50 = vand.u32 4294901760, %v5031_v46 }
 0x25b   :  { %1874 = vmatpush1.msra.mxu0 %v4969_v13  ;;  %2039 = vmatprep.subr.mxu1 %v2038_v5  ;;  %v2056_v7 = vand.u32 4294901760, %v2055_v45  ;;  %v5051_v5 = vsub.f32 %v1811_v57, %v5033_v52  ;;  %v5071_v45 = vsub.f32 %v1809_v30, %v5053_v17  ;;  %v1805_v30 = vld [vmem:[%s6055_s7 + $0x30] sm:$0xff] }
 0x25c   :  { %1876 = vmatprep.subr.mxu0 %v5001_v53  ;;  %6254 = vst [vmem:[#allocation20_spill] sm:$0xff] %v5041_v2  ;;  %2045 = vmatpush1.msra.mxu1 %v2044_v34  ;;  %v2061_v41 = vsub.f32 %v5019_v18, %v6068_v63  ;;  %v6074_v29 = vand.u32 4294901760, %v5041_v2  ;;  %v5063_v34 = vand.u32 4294901760, %v1808_v14  ;;  %v2067_v57 = vsub.f32 %v5031_v46, %v6070_v50 }
 0x25d   :  { %1878 = vmatpush1.msra.mxu0 %v5010_v26  ;;  %6255 = vst [vmem:[#allocation21_spill] sm:$0xff] %v5051_v5  ;;  %2051 = vmatprep.subr.mxu1 %v2050_v19  ;;  %v6077_v19 = vand.u32 4294901760, %v5051_v5  ;;  %6257 = vst [vmem:[#allocation23_spill] sm:$0xff] %v5071_v45  ;;  %v5073_v63 = vand.u32 4294901760, %v1807_v23  ;;  %v6080_v50 = vand.u32 4294901760, %v5061_v3  ;;  %v6085_v15 = vand.u32 4294901760, %v5071_v45 }
 0x25e   :  { %1880 = vmatprep.subr.mxu0 %v5021_v24  ;;  %2057 = vmatpush1.msra.mxu1 %v2056_v7  ;;  %v2062_v39 = vand.u32 4294901760, %v2061_v41  ;;  %v2073_v7 = vsub.f32 %v5041_v2, %v6074_v29  ;;  %v5084_v25 = vsub.f32 %v1808_v14, %v5063_v34  ;;  %v2068_v20 = vand.u32 4294901760, %v2067_v57  ;;  %v1804_v14 = vld [vmem:[%s6055_s7 + $0x28] sm:$0xff] }
 0x25f   :  { %1882 = vmatpush1.msra.mxu0 %v5033_v52  ;;  %v2079_v41 = vsub.f32 %v5051_v5, %v6077_v19  ;;  %v5095_v29 = vsub.f32 %v1807_v23, %v5073_v63  ;;  %v2085_v57 = vsub.f32 %v5061_v3, %v6080_v50  ;;  %v5105_v19 = vand.u32 4294901760, %v1806_v43  ;;  %v1803_v23 = vld [vmem:[%s6055_s7 + $0x20] sm:$0xff]  ;;  %v1802_v50 = vld [vmem:[%s6055_s7 + $0x18] sm:$0xff] }
 0x260   :  { %1884 = vmatprep.subr.mxu0 %v5043_v8  ;;  %6258 = vst [vmem:[#allocation24_spill] sm:$0xff] %v5084_v25  ;;  %2063 = vmatprep.subr.mxu1 %v2062_v39  ;;  %v2074_v9 = vand.u32 4294901760, %v2073_v7  ;;  %v2091_v44 = vsub.f32 %v5071_v45, %v6085_v15  ;;  %v5114_v7 = vand.u32 4294901760, %v1805_v30  ;;  %v6262_v3 = vand.u32 4294901760, %v5084_v25  ;;  %v1801_v15 = vld [vmem:[%s6055_s7 + $0x10] sm:$0xff] }
 0x261   :  { %1886 = vmatpush1.msra.mxu0 %v5053_v17  ;;  %6259 = vst [vmem:[#allocation25_spill] sm:$0xff] %v5095_v29  ;;  %6260 = vst [vmem:[#allocation26_spill] sm:$0xff] %v5105_v19  ;;  %2069 = vmatpush1.msra.mxu1 %v2068_v20  ;;  %v2080_v54 = vand.u32 4294901760, %v2079_v41  ;;  %v2086_v61 = vand.u32 4294901760, %v2085_v57  ;;  %v5123_v20 = vsub.f32 %v1806_v43, %v5105_v19  ;;  %v5125_v41 = vand.u32 4294901760, %v1804_v14  ;;  %v1800_v43 = vld [vmem:[%s6055_s7 + $0x8] sm:$0xff] }
 0x262   :  { %1888 = vmatprep.subr.mxu0 %v5063_v34  ;;  %6261 = vst [vmem:[#allocation27_spill] sm:$0xff] %v5114_v7  ;;  %2075 = vmatprep.subr.mxu1 %v2074_v9  ;;  %v2097_v5 = vsub.f32 %v5084_v25, %v6262_v3  ;;  %v2092_v39 = vand.u32 4294901760, %v2091_v44  ;;  %v6265_v9 = vand.u32 4294901760, %v5095_v29  ;;  %v5135_v45 = vsub.f32 %v1805_v30, %v5114_v7  ;;  %v1799_v30 = vld [vmem:[%s6055_s7] sm:$0xff] }
 0x263   :  { %1890 = vmatpush1.msra.mxu0 %v5073_v63  ;;  %6263 = vst [vmem:[#allocation28_spill] sm:$0xff] %v5123_v20  ;;  %6264 = vst [vmem:[#allocation29_spill] sm:$0xff] %v5125_v41  ;;  %2081 = vmatpush1.msra.mxu1 %v2080_v54  ;;  %v5137_v3 = vand.u32 4294901760, %v1803_v23  ;;  %v6098_v54 = vand.u32 4294901760, %v5123_v20  ;;  %v5145_v44 = vsub.f32 %v1804_v14, %v5125_v41  ;;  %v5147_v2 = vand.u32 4294901760, %v1802_v50 }
 0x264   :  { %1892 = vmatprep.subr.mxu0 %v5105_v19  ;;  %v2103_v57 = vsub.f32 %v5095_v29, %v6265_v9  ;;  %6266 = vst [vmem:[#allocation30_spill] sm:$0xff] %v5135_v45  ;;  %2087 = vmatprep.subr.mxu1 %v2086_v61  ;;  %v2098_v25 = vand.u32 4294901760, %v2097_v5  ;;  %v6103_v29 = vand.u32 4294901760, %v5135_v45  ;;  %v5157_v5 = vand.u32 4294901760, %v1801_v15 }
 0x265   :  { %6267 = vst [vmem:[#allocation31_spill] sm:$0xff] %v5137_v3  ;;  %1894 = vmatpush1.msra.mxu0 %v5114_v7  ;;  %6268 = vst [vmem:[#allocation32_spill] sm:$0xff] %v5145_v44  ;;  %2093 = vmatpush1.msra.mxu1 %v2092_v39  ;;  %v5155_v61 = vsub.f32 %v1803_v23, %v5137_v3  ;;  %v2109_v14 = vsub.f32 %v5123_v20, %v6098_v54  ;;  %v6106_v7 = vand.u32 4294901760, %v5145_v44 }
 0x266   :  { %6269 = vst [vmem:[#allocation33_spill] sm:$0xff] %v5147_v2  ;;  %1896 = vmatprep.subr.mxu0 %v5125_v41  ;;  %v2104_v9 = vand.u32 4294901760, %v2103_v57  ;;  %6271 = vst [vmem:[#allocation35_spill] sm:$0xff] %v5157_v5  ;;  %2099 = vmatprep.subr.mxu1 %v2098_v25  ;;  %v5165_v41 = vsub.f32 %v1802_v50, %v5147_v2  ;;  %v5167_v39 = vand.u32 4294901760, %v1800_v43  ;;  %v5177_v54 = vand.u32 4294901760, %v1799_v30 }
 0x267   :  { %6270 = vst [vmem:[#allocation34_spill] sm:$0xff] %v5155_v61  ;;  %1898 = vmatpush1.msra.mxu0 %v5137_v3  ;;  %v2115_v23 = vsub.f32 %v5135_v45, %v6103_v29  ;;  %v6109_v25 = vand.u32 4294901760, %v5155_v61  ;;  %v5175_v57 = vsub.f32 %v1801_v15, %v5157_v5  ;;  %v2110_v50 = vand.u32 4294901760, %v2109_v14 }
 0x268   :  { %6272 = vst [vmem:[#allocation36_spill] sm:$0xff] %v5165_v41  ;;  %6273 = vst [vmem:[#allocation37_spill] sm:$0xff] %v5167_v39  ;;  %1900 = vmatprep.subr.mxu0 %v5147_v2  ;;  %2105 = vmatpush1.msra.mxu1 %v2104_v9  ;;  %v2121_v20 = vsub.f32 %v5145_v44, %v6106_v7  ;;  %v6112_v9 = vand.u32 4294901760, %v5165_v41  ;;  %v5185_v2 = vsub.f32 %v1800_v43, %v5167_v39 }
 0x269   :  { %6274 = vst [vmem:[#allocation38_spill] sm:$0xff] %v5175_v57  ;;  %6275 = vst [vmem:[#allocation39_spill] sm:$0xff] %v5177_v54  ;;  %1902 = vmatpush1.msra.mxu0 %v5157_v5  ;;  %v2116_v29 = vand.u32 4294901760, %v2115_v23  ;;  %v2127_v15 = vsub.f32 %v5155_v61, %v6109_v25  ;;  %v6114_v45 = vand.u32 4294901760, %v5175_v57  ;;  %v5193_v14 = vsub.f32 %v1799_v30, %v5177_v54 }
 0x26a   :  { %6276 = vst [vmem:[#allocation40_spill] sm:$0xff] %v5185_v2  ;;  %1904 = vmatprep.subr.mxu0 %v5167_v39  ;;  %2111 = vmatprep.subr.mxu1 %v2110_v50  ;;  %v2122_v7 = vand.u32 4294901760, %v2121_v20  ;;  %v2133_v43 = vsub.f32 %v5165_v41, %v6112_v9  ;;  %v6113_v44 = vand.u32 4294901760, %v5185_v2  ;;  %v6125_v50 = vmov 0.0  }
 0x26b   :  { %6277 = vst [vmem:[#allocation41_spill] sm:$0xff] %v5193_v14  ;;  %1906 = vmatpush1.msra.mxu0 %v5177_v54  ;;  %2117 = vmatpush1.msra.mxu1 %v2116_v29  ;;  %v2128_v23 = vand.u32 4294901760, %v2127_v15  ;;  %v2139_v25 = vsub.f32 %v5175_v57, %v6114_v45  ;;  %v6122_v30 = vand.u32 4294901760, %v5193_v14 }
 0x26c   :  { %2203 = vmatprep.subr.mxu0 %v4808_v33  ;;  %2123 = vmatprep.subr.mxu1 %v2122_v7  ;;  %v2134_v61 = vand.u32 4294901760, %v2133_v43  ;;  %v2145_v20 = vsub.f32 %v5185_v2, %v6113_v44  ;;  %v3721_v44 = vld [vmem:[#allocation10] ss:$0 sm:$0xff] }
 0x26d   :  { %2186 = vmatprep.mubr.f32.mxu1 %v6125_v50  ;;  %2129 = vmatpush1.msra.mxu1 %v2128_v23  ;;  %v2140_v9 = vand.u32 4294901760, %v2139_v25  ;;  %v2151_v29 = vsub.f32 %v5193_v14, %v6122_v30 }
 0x26e   :  { %1939 = vmatprep.mubr.f32.mxu0 %v6125_v50  ;;  %2135 = vmatprep.subr.mxu1 %v2134_v61  ;;  %v2146_v15 = vand.u32 4294901760, %v2145_v20 }
 0x26f   :  { %2141 = vmatpush1.msra.mxu1 %v2140_v9  ;;  %v2152_v7 = vand.u32 4294901760, %v2151_v29 }
 0x270   :  { %2147 = vmatprep.subr.mxu1 %v2146_v15 }
 0x271   :  { %2153 = vmatpush1.msra.mxu1 %v2152_v7 }
 0x272   :  { %2347 = vmatprep.subr.mxu1 %v4797_v28 }
 0x2e2   :  { %v4216_v45 = vpop.f32.mrf.mxu1 }
 0x2e4   :  { %v1417_v57 = vpop.f32.mrf.mxu1 }
 0x2ea   :  { %v4197_v43 = vpop.f32.mrf.mxu0 }
 0x2eb   :  { %v1307_v23 = vadd.f32 %v4197_v43, %v3721_v44 }
 0x2ec   :  { %v1296_v33 = vpop.f32.mrf.mxu0 }
 0x2ed   :  { %v1297_v2 = vadd.f32 %v3721_v44, %v1296_v33  ;;  %v1424_v41 = vadd.f32 %v4216_v45, %v1307_v23  ;;  %v6285_v23 = vld [vmem:[#allocation29_spill] sm:$0xff] }
 0x2ef   :  { %v1418_v61 = vadd.f32 %v1417_v57, %v1297_v2  ;;  %v6281_v57 = vld [vmem:[#allocation26_spill] sm:$0xff] }
 0x2f3   :  { %v4254_v30 = vpop.f32.mrf.mxu1 }
 0x2f5   :  { %v1599_v9 = vpop.f32.mrf.mxu1 }
 0x2fb   :  { %v4235_v25 = vpop.f32.mrf.mxu0 }
 0x2fc   :  { %v1519_v50 = vadd.f32 %v4235_v25, %v1424_v41  ;;  %v6286_v25 = vld [vmem:[#allocation21_spill] sm:$0xff] }
 0x2fd   :  { %v1511_v14 = vpop.f32.mrf.mxu0 }
 0x2fe   :  { %v1512_v20 = vadd.f32 %v1511_v14, %v1418_v61  ;;  %v1608_v29 = vadd.f32 %v4254_v30, %v1519_v50  ;;  %v6282_v14 = vld [vmem:[#allocation19_spill] sm:$0xff]  ;;  %v6284_v50 = vld [vmem:[#allocation20_spill] sm:$0xff] }
 0x2ff   :  { %v6283_v30 = vld [vmem:[#allocation27_spill] sm:$0xff] }
 0x300   :  { %v1600_v28 = vadd.f32 %v1599_v9, %v1512_v20  ;;  %v6287_v61 = vld [vmem:[#allocation31_spill] sm:$0xff]  ;;  %v6288_v20 = vld [vmem:[#allocation22_spill] sm:$0xff]  ;;  %v6289_v9 = vld [vmem:[#allocation33_spill] sm:$0xff] }
 0x305   :  { %v4292_v15 = vpop.f32.mrf.mxu1 }
 0x307   :  { %v1787_v46 = vpop.f32.mrf.mxu1 }
 0x30c   :  { %v4273_v7 = vpop.f32.mrf.mxu0 }
 0x30d   :  { %v1709_v54 = vadd.f32 %v4273_v7, %v1608_v29  ;;  %v6290_v29 = vld [vmem:[#allocation23_spill] sm:$0xff]  ;;  %v6292_v7 = vld [vmem:[#allocation24_spill] sm:$0xff] }
 0x30e   :  { %v1702_v39 = vpop.f32.mrf.mxu0 }
 0x30f   :  { %v1794_v5 = vadd.f32 %v4292_v15, %v1709_v54  ;;  %v1703_v3 = vadd.f32 %v1702_v39, %v1600_v28  ;;  %v6280_v54 = vmov 0.0   ;;  %v6291_v15 = vld [vmem:[#allocation35_spill] sm:$0xff] }
 0x311   :  { %v1798_v43 = vmax.f32 %v1794_v5, 0.0  ;;  %v1788_v19 = vadd.f32 %v1787_v46, %v1703_v3 }
 0x313   :  { %v5214_v33 = vand.u32 4294901760, %v1798_v43  ;;  %v1797_v45 = vmax.f32 %v1788_v19, 0.0 }
 0x315   :  { %6278 = vst [vmem:[#allocation42_spill] sm:$0xff] %v5214_v33  ;;  %v5216_v44 = vand.u32 4294901760, %v1797_v45  ;;  %v5219_v2 = vsub.f32 %v1798_v43, %v5214_v33  ;;  %v6293_v43 = vld [vmem:[#allocation37_spill] sm:$0xff] }
 0x317   :  { %6279 = vst [vmem:[#allocation43_spill] sm:$0xff] %v5216_v44  ;;  %v5222_v41 = vsub.f32 %v1797_v45, %v5216_v44  ;;  %2188 = vmatmul.mubr.f32.vlgmr.msra.gmra.mxu1 %v5216_v44  ;;  %v6140_v46 = vand.u32 4294901760, %v5219_v2  ;;  %v6294_v45 = vld [vmem:[#allocation25_spill] sm:$0xff]  ;;  %v6301_v44 = vld [vmem:[#allocation36_spill] sm:$0xff] }
 0x318   :  { %2349 = vmatpush1.msra.mxu1 %v4802_v31  ;;  %2193 = vmatprep.mubr.f32.mxu1 %v6280_v54 }
 0x319   :  { %v1942_v28 = vand.u32 4294901760, %v5222_v41  ;;  %2351 = vmatprep.subr.mxu1 %v4810_v36  ;;  %v1954_v5 = vsub.f32 %v5219_v2, %v6140_v46  ;;  %v6299_v46 = vld [vmem:[#allocation32_spill] sm:$0xff] }
 0x31a   :  { %2353 = vmatpush1.msra.mxu1 %v4819_v42 }
 0x31b   :  { %2355 = vmatprep.subr.mxu1 %v4829_v49  ;;  %2195 = vmatmul.mubr.f32.gmra.mxu1 %v5214_v33  ;;  %v1943_v19 = vsub.f32 %v5222_v41, %v1942_v28  ;;  %v1955_v39 = vand.u32 4294901760, %v1954_v5  ;;  %v6297_v5 = vld [vmem:[#allocation17_spill] sm:$0xff]  ;;  %v6300_v33 = vld [vmem:[#allocation34_spill] sm:$0xff] }
 0x31c   :  { %2357 = vmatpush1.msra.mxu1 %v4839_v56  ;;  %2442 = vmatprep.mubr.f32.mxu1 %v6280_v54 }
 0x31d   :  { %2359 = vmatprep.subr.mxu1 %v4852_v1  ;;  %v1944_v3 = vand.u32 4294901760, %v1943_v19  ;;  %v6295_v19 = vld [vmem:[#allocation39_spill] sm:$0xff] }
 0x31e   :  { %2361 = vmatpush1.msra.mxu1 %v4865_v11 }
 0x31f   :  { %2363 = vmatprep.subr.mxu1 %v4897_v27  ;;  %1945 = vmatmul.mubr.f32.vlgmr.msra.gmra.mxu0 %v1944_v3  ;;  %v6296_v3 = vld [vmem:[#allocation28_spill] sm:$0xff] }
 0x320   :  { %2206 = vmatpush1.msra.mxu0 %v4817_v38  ;;  %2365 = vmatpush1.msra.mxu1 %v4906_v40 }
 0x321   :  { %2209 = vmatprep.subr.mxu0 %v4827_v48  ;;  %2367 = vmatprep.subr.mxu1 %v4917_v51 }
 0x322   :  { %2212 = vmatpush1.msra.mxu0 %v4837_v55  ;;  %2369 = vmatpush1.msra.mxu1 %v4929_v62 }
 0x323   :  { %1950 = vmatprep.mubr.f32.mxu0 %v6280_v54  ;;  %2215 = vmatprep.subr.mxu0 %v4850_v0 }
 0x324   :  { %2371 = vmatprep.subr.mxu1 %v4939_v6  ;;  %1956 = vmatmul.mubr.f32.gmra.mxu0 %v1955_v39  ;;  %v6298_v39 = vld [vmem:[#allocation30_spill] sm:$0xff] }
 0x325   :  { %2218 = vmatpush1.msra.mxu0 %v4863_v10  ;;  %2373 = vmatpush1.msra.mxu1 %v4949_v37 }
 0x326   :  { %2221 = vmatprep.subr.mxu0 %v4876_v16  ;;  %2375 = vmatprep.subr.mxu1 %v4959_v60 }
 0x327   :  { %2224 = vmatpush1.msra.mxu0 %v4887_v21  ;;  %2377 = vmatpush1.msra.mxu1 %v4969_v13 }
 0x328   :  { %2227 = vmatprep.subr.mxu0 %v4915_v47  ;;  %2379 = vmatprep.subr.mxu1 %v5001_v53 }
 0x329   :  { %2230 = vmatpush1.msra.mxu0 %v4927_v58  ;;  %2381 = vmatpush1.msra.mxu1 %v5010_v26 }
 0x32a   :  { %2233 = vmatprep.subr.mxu0 %v4937_v4  ;;  %2383 = vmatprep.subr.mxu1 %v5021_v24 }
 0x32b   :  { %2236 = vmatpush1.msra.mxu0 %v4947_v32  ;;  %2385 = vmatpush1.msra.mxu1 %v5033_v52 }
 0x32c   :  { %2239 = vmatprep.subr.mxu0 %v4957_v59  ;;  %2387 = vmatprep.subr.mxu1 %v5043_v8 }
 0x32d   :  { %2242 = vmatpush1.msra.mxu0 %v4967_v12  ;;  %2389 = vmatpush1.msra.mxu1 %v5053_v17 }
 0x32e   :  { %2245 = vmatprep.subr.mxu0 %v4980_v22  ;;  %2391 = vmatprep.subr.mxu1 %v5063_v34 }
 0x32f   :  { %2248 = vmatpush1.msra.mxu0 %v4991_v35  ;;  %2393 = vmatpush1.msra.mxu1 %v5073_v63 }
 0x330   :  { %2251 = vmatprep.subr.mxu0 %v5019_v18  ;;  %2395 = vmatprep.subr.mxu1 %v6281_v57 }
 0x331   :  { %2254 = vmatpush1.msra.mxu0 %v6282_v14  ;;  %2397 = vmatpush1.msra.mxu1 %v6283_v30 }
 0x332   :  { %2257 = vmatprep.subr.mxu0 %v6284_v50  ;;  %2399 = vmatprep.subr.mxu1 %v6285_v23 }
 0x333   :  { %2260 = vmatpush1.msra.mxu0 %v6286_v25  ;;  %2401 = vmatpush1.msra.mxu1 %v6287_v61 }
 0x334   :  { %2263 = vmatprep.subr.mxu0 %v6288_v20  ;;  %2403 = vmatprep.subr.mxu1 %v6289_v9 }
 0x335   :  { %2266 = vmatpush1.msra.mxu0 %v6290_v29  ;;  %2405 = vmatpush1.msra.mxu1 %v6291_v15 }
 0x336   :  { %2269 = vmatprep.subr.mxu0 %v6292_v7  ;;  %2407 = vmatprep.subr.mxu1 %v6293_v43 }
 0x337   :  { %2272 = vmatpush1.msra.mxu0 %v6294_v45  ;;  %2409 = vmatpush1.msra.mxu1 %v6295_v19 }
 0x338   :  { %2275 = vmatprep.subr.mxu0 %v6296_v3  ;;  %2446 = vmatmul.mubr.f32.vlgmr.msra.gmra.mxu1 %v1942_v28  ;;  %v6302_v28 = vand.u32 4294901760, %v5219_v2 }
 0x339   :  { %2637 = vmatprep.subr.mxu1 %v6297_v5  ;;  %2278 = vmatpush1.msra.mxu0 %v6298_v39  ;;  %v6303_v5 = vld [vmem:[#allocation38_spill] sm:$0xff] }
 0x33a   :  { %2639 = vmatpush1.msra.mxu1 %v4802_v31  ;;  %2281 = vmatprep.subr.mxu0 %v6299_v46  ;;  %v6304_v31 = vld [vmem:[#allocation40_spill] sm:$0xff] }
 0x33b   :  { %2641 = vmatprep.subr.mxu1 %v4810_v36  ;;  %2284 = vmatpush1.msra.mxu0 %v6300_v33  ;;  %v6305_v36 = vld [vmem:[#allocation41_spill] sm:$0xff] }
 0x33c   :  { %2451 = vmatprep.mubr.f32.mxu1 %v6280_v54  ;;  %2643 = vmatpush1.msra.mxu1 %v4819_v42  ;;  %v6306_v42 = vld [vmem:[#allocation18_spill] sm:$0xff] }
 0x33d   :  { %2287 = vmatprep.subr.mxu0 %v6301_v44  ;;  %2455 = vmatmul.mubr.f32.gmra.mxu1 %v6302_v28  ;;  %v6307_v28 = vand.u32 4294901760, %v6306_v42 }
 0x33e   :  { %2645 = vmatprep.subr.mxu1 %v4829_v49  ;;  %2290 = vmatpush1.msra.mxu0 %v6303_v5  ;;  %v6308_v49 = vand.u32 4294901760, %v4817_v38  ;;  %v6312_v38 = vand.u32 4294901760, %v4863_v10  ;;  %v6316_v10 = vand.u32 4294901760, %v4927_v58  ;;  %v6323_v58 = vand.u32 4294901760, %v5019_v18 }
 0x33f   :  { %2647 = vmatpush1.msra.mxu1 %v4839_v56  ;;  %2293 = vmatprep.subr.mxu0 %v6304_v31  ;;  %v6309_v56 = vand.u32 4294901760, %v4827_v48  ;;  %v6313_v48 = vand.u32 4294901760, %v4876_v16  ;;  %v6317_v16 = vand.u32 4294901760, %v4937_v4  ;;  %v6325_v4 = vand.u32 4294901760, %v6284_v50 }
 0x340   :  { %2649 = vmatprep.subr.mxu1 %v4852_v1  ;;  %2296 = vmatpush1.msra.mxu0 %v6305_v36  ;;  %v6310_v1 = vand.u32 4294901760, %v4837_v55  ;;  %v6314_v55 = vand.u32 4294901760, %v4887_v21  ;;  %v6318_v21 = vand.u32 4294901760, %v4947_v32  ;;  %v6327_v32 = vand.u32 4294901760, %v6288_v20 }
 0x341   :  { %2329 = vmatprep.mubr.f32.mxu0 %v6280_v54  ;;  %2651 = vmatpush1.msra.mxu1 %v4865_v11  ;;  %v6311_v11 = vand.u32 4294901760, %v4850_v0  ;;  %v6315_v0 = vand.u32 4294901760, %v4915_v47  ;;  %v6321_v47 = vand.u32 4294901760, %v4980_v22  ;;  %v6334_v22 = vand.u32 4294901760, %v6299_v46 }
 0x342   :  { %2332 = vmatmul.mubr.f32.vlgmr.msra.gmra.mxu0 %v5222_v41  ;;  %2464 = vmatprep.subr.mxu0 %v6307_v28  ;;  %v6339_v18 = vand.u32 4294901760, %v6304_v31 }
 0x343   :  { %2653 = vmatprep.subr.mxu1 %v4897_v27  ;;  %2468 = vmatpush1.msra.mxu0 %v6308_v49  ;;  %v6319_v27 = vand.u32 4294901760, %v4957_v59  ;;  %v6329_v59 = vand.u32 4294901760, %v6292_v7 }
 0x344   :  { %2655 = vmatpush1.msra.mxu1 %v4906_v40  ;;  %2472 = vmatprep.subr.mxu0 %v6309_v56  ;;  %v6320_v40 = vand.u32 4294901760, %v4967_v12  ;;  %v6332_v12 = vld [vmem:[#allocation43_spill] sm:$0xff] }
 0x345   :  { %2657 = vmatprep.subr.mxu1 %v4917_v51  ;;  %2337 = vmatprep.mubr.f32.mxu0 %v6280_v54  ;;  %v6322_v51 = vand.u32 4294901760, %v4991_v35  ;;  %v6335_v35 = vand.u32 4294901760, %v6300_v33 }
 0x346   :  { %2476 = vmatpush1.msra.mxu0 %v6310_v1  ;;  %2659 = vmatpush1.msra.mxu1 %v4929_v62  ;;  %v6324_v62 = vand.u32 4294901760, %v6282_v14  ;;  %v2780_v14 = vld [vmem:[%s6057_s9 + $0xe8] sm:$0xff]  ;;  %v2762_v1 = vld [vmem:[%s6057_s9 + $0x58] sm:$0xff] }
 0x347   :  { %2340 = vmatmul.mubr.f32.gmra.mxu0 %v5219_v2  ;;  %2480 = vmatprep.subr.mxu0 %v6311_v11 }
 0x348   :  { %2661 = vmatprep.subr.mxu1 %v4939_v6  ;;  %2484 = vmatpush1.msra.mxu0 %v6312_v38  ;;  %v6326_v6 = vand.u32 4294901760, %v6286_v25  ;;  %v2764_v25 = vld [vmem:[%s6057_s9 + $0x68] sm:$0xff] }
 0x349   :  { %2663 = vmatpush1.msra.mxu1 %v4949_v37  ;;  %2488 = vmatprep.subr.mxu0 %v6313_v48  ;;  %v6328_v37 = vand.u32 4294901760, %v6290_v29  ;;  %v2779_v29 = vld [vmem:[%s6057_s9 + $0xe0] sm:$0xff] }
 0x34a   :  { %2665 = vmatprep.subr.mxu1 %v4959_v60  ;;  %2492 = vmatpush1.msra.mxu0 %v6314_v55  ;;  %v6330_v60 = vand.u32 4294901760, %v6294_v45 }
 0x34b   :  { %2667 = vmatpush1.msra.mxu1 %v4969_v13  ;;  %2496 = vmatprep.subr.mxu0 %v6315_v0  ;;  %v6333_v13 = vand.u32 4294901760, %v6298_v39  ;;  %v2777_v0 = vld [vmem:[%s6057_s9 + $0xd0] sm:$0xff] }
 0x34c   :  { %2669 = vmatprep.subr.mxu1 %v5001_v53  ;;  %2500 = vmatpush1.msra.mxu0 %v6316_v10  ;;  %v6337_v53 = vld [vmem:[#allocation42_spill] sm:$0xff] }
 0x34d   :  { %2671 = vmatpush1.msra.mxu1 %v5010_v26  ;;  %2504 = vmatprep.subr.mxu0 %v6317_v16  ;;  %v6338_v26 = vand.u32 4294901760, %v6303_v5 }
 0x34e   :  { %2673 = vmatprep.subr.mxu1 %v5021_v24  ;;  %2508 = vmatpush1.msra.mxu0 %v6318_v21  ;;  %v6340_v24 = vand.u32 4294901760, %v6305_v36  ;;  %v2778_v36 = vld [vmem:[%s6057_s9 + $0xd8] sm:$0xff] }
 0x34f   :  { %2675 = vmatpush1.msra.mxu1 %v5033_v52  ;;  %2512 = vmatprep.subr.mxu0 %v6319_v27  ;;  %v6336_v52 = vand.u32 4294901760, %v6301_v44  ;;  %v2781_v44 = vld [vmem:[%s6057_s9 + $0xf0] sm:$0xff]  ;;  %v5515_v27 = vand.u32 4294901760, %v2778_v36 }
 0x350   :  { %2677 = vmatprep.subr.mxu1 %v5043_v8  ;;  %2516 = vmatpush1.msra.mxu0 %v6320_v40  ;;  %v6331_v8 = vand.u32 4294901760, %v6296_v3  ;;  %v5428_v41 = vand.u32 4294901760, %v2781_v44  ;;  %v2761_v40 = vld [vmem:[%s6057_s9 + $0x50] sm:$0xff] }
 0x351   :  { %2679 = vmatpush1.msra.mxu1 %v5053_v17  ;;  %2520 = vmatprep.subr.mxu0 %v6321_v47 }
 0x352   :  { %2681 = vmatprep.subr.mxu1 %v5063_v34  ;;  %2524 = vmatpush1.msra.mxu0 %v6322_v51  ;;  %v2766_v34 = vld [vmem:[%s6057_s9 + $0x78] sm:$0xff]  ;;  %v5445_v50 = vsub.f32 %v2781_v44, %v5428_v41 }
 0x353   :  { %2683 = vmatpush1.msra.mxu1 %v5073_v63  ;;  %2528 = vmatprep.subr.mxu0 %v6323_v58  ;;  %v2782_v63 = vld [vmem:[%s6057_s9 + $0xf8] sm:$0xff]  ;;  %v5420_v33 = vand.u32 4294901760, %v2766_v34 }
 0x354   :  { %2685 = vmatprep.subr.mxu1 %v6281_v57  ;;  %2532 = vmatpush1.msra.mxu0 %v6324_v62  ;;  %v5415_v17 = vand.u32 4294901760, %v2782_v63  ;;  %v5524_v62 = vand.u32 4294901760, %v2762_v1 }
 0x355   :  { %2687 = vmatpush1.msra.mxu1 %v6283_v30  ;;  %2536 = vmatprep.subr.mxu0 %v6325_v4  ;;  %v5435_v46 = vsub.f32 %v2766_v34, %v5420_v33  ;;  %v2776_v4 = vld [vmem:[%s6057_s9 + $0xc8] sm:$0xff] }
 0x356   :  { %2689 = vmatprep.subr.mxu1 %v6285_v23  ;;  %2540 = vmatpush1.msra.mxu0 %v6326_v6  ;;  %6341 = vst [vmem:[#allocation26_spill] sm:$0xff] %v5415_v17  ;;  %v5426_v2 = vsub.f32 %v2782_v63, %v5415_v17  ;;  %v5447_v23 = vand.u32 4294901760, %v2780_v14 }
 0x357   :  { %2691 = vmatpush1.msra.mxu1 %v6287_v61  ;;  %2544 = vmatprep.subr.mxu0 %v6327_v32  ;;  %v6163_v61 = vand.u32 4294901760, %v5435_v46 }
 0x358   :  { %2693 = vmatprep.subr.mxu1 %v6289_v9  ;;  %2548 = vmatpush1.msra.mxu0 %v6328_v37  ;;  %6342 = vst [vmem:[#allocation19_spill] sm:$0xff] %v5426_v2  ;;  %v6164_v30 = vand.u32 4294901760, %v5426_v2  ;;  %v5457_v9 = vand.u32 4294901760, %v2764_v25  ;;  %v5471_v45 = vsub.f32 %v2780_v14, %v5447_v23  ;;  %v5533_v37 = vsub.f32 %v2778_v36, %v5515_v27 }
 0x359   :  { %2695 = vmatpush1.msra.mxu1 %v6291_v15  ;;  %2552 = vmatprep.subr.mxu0 %v6329_v59  ;;  %v2763_v15 = vld [vmem:[%s6057_s9 + $0x60] sm:$0xff]  ;;  %v2921_v3 = vsub.f32 %v5435_v46, %v6163_v61  ;;  %v5535_v59 = vand.u32 4294901760, %v2777_v0 }
 0x35a   :  { %2697 = vmatprep.subr.mxu1 %v6293_v43  ;;  %2556 = vmatpush1.msra.mxu0 %v6330_v60  ;;  %v3033_v7 = vsub.f32 %v5426_v2, %v6164_v30  ;;  %v6161_v43 = vand.u32 4294901760, %v5445_v50  ;;  %v5481_v5 = vsub.f32 %v2764_v25, %v5457_v9  ;;  %v5483_v31 = vand.u32 4294901760, %v2763_v15  ;;  %v2760_v60 = vld [vmem:[%s6057_s9 + $0x48] sm:$0xff] }
 0x35b   :  { %2699 = vmatpush1.msra.mxu1 %v6295_v19  ;;  %2732 = vmatprep.mubr.f32.mxu1 %v6280_v54  ;;  %v5473_v19 = vand.u32 4294901760, %v2779_v29  ;;  %v6158_v49 = vand.u32 4294901760, %v5471_v45  ;;  %v2922_v11 = vand.u32 4294901760, %v2921_v3 }
 0x35c   :  { %2560 = vmatprep.subr.mxu0 %v6331_v8  ;;  %2734 = vmatmul.mubr.f32.vlgmr.msra.gmra.mxu1 %v6332_v12  ;;  %v3034_v42 = vand.u32 4294901760, %v3033_v7  ;;  %v3040_v28 = vsub.f32 %v5445_v50, %v6161_v43  ;;  %v6157_v48 = vand.u32 4294901760, %v5481_v5  ;;  %v5505_v55 = vsub.f32 %v2763_v15, %v5483_v31 }
 0x35d   :  { %2564 = vmatpush1.msra.mxu0 %v6333_v13  ;;  %2739 = vmatprep.mubr.f32.mxu1 %v6280_v54  ;;  %v5494_v56 = vsub.f32 %v2779_v29, %v5473_v19  ;;  %v3047_v16 = vsub.f32 %v5471_v45, %v6158_v49  ;;  %v5545_v13 = vsub.f32 %v2762_v1, %v5524_v62 }
 0x35e   :  { %2568 = vmatprep.subr.mxu0 %v6334_v22  ;;  %2621 = vmatprep.mubr.f32.mxu0 %v6280_v54  ;;  %v3041_v10 = vand.u32 4294901760, %v3040_v28  ;;  %v2935_v51 = vsub.f32 %v5481_v5, %v6157_v48  ;;  %v6154_v58 = vand.u32 4294901760, %v5505_v55  ;;  %v5547_v22 = vand.u32 4294901760, %v2761_v40  ;;  %v2774_v28 = vld [vmem:[%s6057_s9 + $0xb8] sm:$0xff] }
 0x35f   :  { %2572 = vmatpush1.msra.mxu0 %v6335_v35  ;;  %3881 = vmatprep.subr.mxu1 %v3034_v42  ;;  %v6156_v21 = vand.u32 4294901760, %v5494_v56  ;;  %v3048_v6 = vand.u32 4294901760, %v3047_v16  ;;  %v2775_v35 = vld [vmem:[%s6057_s9 + $0xc0] sm:$0xff]  ;;  %v6151_v34 = vand.u32 4294901760, %v5545_v13 }
 0x360   :  { %2576 = vmatprep.subr.mxu0 %v6336_v52  ;;  %2741 = vmatmul.mubr.f32.gmra.mxu1 %v6337_v53  ;;  %v2936_v8 = vand.u32 4294901760, %v2935_v51  ;;  %v5565_v44 = vsub.f32 %v2761_v40, %v5547_v22  ;;  %v5577_v15 = vand.u32 4294901760, %v2775_v35 }
 0x361   :  { %2580 = vmatpush1.msra.mxu0 %v6338_v26  ;;  %3882 = vmatpush3.msra.mxu1 %v2922_v11  ;;  %v3054_v32 = vsub.f32 %v5494_v56, %v6156_v21  ;;  %v5555_v26 = vsub.f32 %v2777_v0, %v5535_v59  ;;  %v2949_v7 = vsub.f32 %v5545_v13, %v6151_v34 }
 0x362   :  { %2584 = vmatprep.subr.mxu0 %v6339_v18  ;;  %3883 = vmatprep.subr.mxu1 %v3041_v10  ;;  %v5557_v18 = vand.u32 4294901760, %v2776_v4  ;;  %v6148_v3 = vand.u32 4294901760, %v5565_v44  ;;  %v5598_v0 = vsub.f32 %v2775_v35, %v5577_v15  ;;  %v2758_v10 = vld [vmem:[%s6057_s9 + $0x38] sm:$0xff] }
 0x363   :  { %2588 = vmatpush1.msra.mxu0 %v6340_v24  ;;  %v3055_v52 = vand.u32 4294901760, %v3054_v32  ;;  %v2759_v24 = vld [vmem:[%s6057_s9 + $0x40] sm:$0xff]  ;;  %v6150_v25 = vand.u32 4294901760, %v5555_v26  ;;  %v2950_v16 = vand.u32 4294901760, %v2949_v7 }
 0x364   :  { %2623 = vmatmul.mubr.f32.vlgmr.msra.gmra.mxu0 %v6332_v12  ;;  %3843 = vmatprep.subr.mxu0 %v5415_v17  ;;  %v2942_v12 = vsub.f32 %v5505_v55, %v6154_v58  ;;  %v5575_v29 = vsub.f32 %v2776_v4, %v5557_v18  ;;  %v5587_v42 = vand.u32 4294901760, %v2759_v24  ;;  %6345 = vst [vmem:[#allocation29_spill] sm:$0xff] %v5598_v0  ;;  %v2773_v4 = vld [vmem:[%s6057_s9 + $0xb0] sm:$0xff] }
 0x365   :  { %2628 = vmatprep.mubr.f32.mxu0 %v6280_v54  ;;  %v2765_v54 = vld [vmem:[%s6057_s9 + $0x70] sm:$0xff]  ;;  %3844 = vmatpush3.msra.mxu0 %v5420_v33  ;;  %v3068_v11 = vsub.f32 %v5555_v26, %v6150_v25  ;;  %v2956_v40 = vsub.f32 %v5565_v44, %v6148_v3 }
 0x366   :  { %v5437_v57 = vand.u32 4294901760, %v2765_v54  ;;  %3845 = vmatprep.subr.mxu0 %v5428_v41  ;;  %v2943_v63 = vand.u32 4294901760, %v2942_v12  ;;  %6343 = vst [vmem:[#allocation27_spill] sm:$0xff] %v5575_v29  ;;  %v5609_v51 = vsub.f32 %v2759_v24, %v5587_v42  ;;  %v2757_v12 = vld [vmem:[%s6057_s9 + $0x30] sm:$0xff] }
 0x367   :  { %v2957_v35 = vand.u32 4294901760, %v2956_v40  ;;  %v2756_v40 = vld [vmem:[%s6057_s9 + $0x28] sm:$0xff] }
 0x368   :  { %2630 = vmatmul.mubr.f32.gmra.mxu0 %v6337_v53  ;;  %v5455_v20 = vsub.f32 %v2765_v54, %v5437_v57  ;;  %v6152_v53 = vand.u32 4294901760, %v5533_v37  ;;  %v5567_v54 = vand.u32 4294901760, %v2760_v60  ;;  %6346 = vst [vmem:[#allocation21_spill] sm:$0xff] %v5609_v51  ;;  %v6149_v24 = vand.u32 4294901760, %v5609_v51 }
 0x369   :  { %3846 = vmatpush3.msra.mxu0 %v5437_v57 }
 0x36a   :  { %3847 = vmatprep.subr.mxu0 %v5447_v23  ;;  %v6160_v39 = vand.u32 4294901760, %v5455_v20  ;;  %v3061_v14 = vsub.f32 %v5533_v37, %v6152_v53  ;;  %v5585_v36 = vsub.f32 %v2760_v60, %v5567_v54  ;;  %v6146_v60 = vand.u32 4294901760, %v5598_v0 }
 0x36b   :  { %3848 = vmatpush3.msra.mxu0 %v5457_v9 }
 0x36c   :  { %3849 = vmatprep.subr.mxu0 %v5473_v19  ;;  %v2928_v38 = vsub.f32 %v5455_v20, %v6160_v39  ;;  %6344 = vst [vmem:[#allocation20_spill] sm:$0xff] %v5585_v36  ;;  %v3062_v1 = vand.u32 4294901760, %v3061_v14  ;;  %v2772_v14 = vld [vmem:[%s6057_s9 + $0xa8] sm:$0xff] }
 0x36d   :  { %3850 = vmatpush3.msra.mxu0 %v5483_v31  ;;  %v5661_v3 = vand.u32 4294901760, %v2772_v14 }
 0x36e   :  { %v2929_v47 = vand.u32 4294901760, %v2928_v38  ;;  %3851 = vmatprep.subr.mxu0 %v5515_v27  ;;  %v6147_v38 = vand.u32 4294901760, %v5575_v29 }
 0x36f   :  { %3852 = vmatpush3.msra.mxu0 %v5524_v62  ;;  %6351 = vst [vmem:[#allocation35_spill] sm:$0xff] %v5661_v3  ;;  %v5679_v53 = vsub.f32 %v2772_v14, %v5661_v3  ;;  %v2770_v14 = vld [vmem:[%s6057_s9 + $0x98] sm:$0xff] }
 0x370   :  { %3884 = vmatpush3.msra.mxu1 %v2929_v47  ;;  %3853 = vmatprep.subr.mxu0 %v5535_v59  ;;  %v6145_v47 = vand.u32 4294901760, %v5585_v36  ;;  %v3075_v32 = vsub.f32 %v5575_v29, %v6147_v38 }
 0x371   :  { %3885 = vmatprep.subr.mxu1 %v3048_v6  ;;  %3854 = vmatpush3.msra.mxu0 %v5547_v22  ;;  %v3069_v6 = vand.u32 4294901760, %v3068_v11  ;;  %6354 = vst [vmem:[#allocation25_spill] sm:$0xff] %v5679_v53 }
 0x372   :  { %3886 = vmatpush3.msra.mxu1 %v2936_v8  ;;  %3855 = vmatprep.subr.mxu0 %v5557_v18  ;;  %v5619_v8 = vand.u32 4294901760, %v2774_v28  ;;  %v3076_v7 = vand.u32 4294901760, %v3075_v32 }
 0x373   :  { %3887 = vmatprep.subr.mxu1 %v3055_v52  ;;  %3856 = vmatpush3.msra.mxu0 %v5567_v54  ;;  %v2963_v52 = vsub.f32 %v5585_v36, %v6145_v47 }
 0x374   :  { %3888 = vmatpush3.msra.mxu1 %v2943_v63  ;;  %3857 = vmatprep.subr.mxu0 %v5577_v15  ;;  %v5628_v63 = vand.u32 4294901760, %v2758_v10  ;;  %v5637_v11 = vsub.f32 %v2774_v28, %v5619_v8  ;;  %v2771_v28 = vld [vmem:[%s6057_s9 + $0xa0] sm:$0xff] }
 0x375   :  { %3858 = vmatpush3.msra.mxu0 %v5587_v42  ;;  %3889 = vmatprep.subr.mxu1 %v3062_v1  ;;  %v3082_v1 = vsub.f32 %v5598_v0, %v6146_v60  ;;  %v2964_v47 = vand.u32 4294901760, %v2963_v52  ;;  %v5651_v60 = vand.u32 4294901760, %v2757_v12 }
 0x376   :  { %3890 = vmatpush3.msra.mxu1 %v2950_v16  ;;  %6347 = vst [vmem:[#allocation31_spill] sm:$0xff] %v5637_v11  ;;  %v5639_v16 = vand.u32 4294901760, %v2773_v4  ;;  %3859 = vmatprep.subr.mxu0 %v5619_v8  ;;  %v5649_v32 = vsub.f32 %v2758_v10, %v5628_v63  ;;  %v2755_v10 = vld [vmem:[%s6057_s9 + $0x20] sm:$0xff] }
 0x377   :  { %3891 = vmatprep.subr.mxu1 %v3069_v6  ;;  %v2970_v6 = vsub.f32 %v5609_v51, %v6149_v24  ;;  %6349 = vst [vmem:[#allocation33_spill] sm:$0xff] %v5651_v60  ;;  %3860 = vmatpush3.msra.mxu0 %v5628_v63  ;;  %v3083_v38 = vand.u32 4294901760, %v3082_v1  ;;  %v5671_v1 = vand.u32 4294901760, %v2756_v40 }
 0x378   :  { %3892 = vmatpush3.msra.mxu1 %v2957_v35  ;;  %6348 = vst [vmem:[#allocation22_spill] sm:$0xff] %v5649_v32  ;;  %v6153_v35 = vand.u32 4294901760, %v5637_v11  ;;  %v5659_v52 = vsub.f32 %v2773_v4, %v5639_v16  ;;  %3861 = vmatprep.subr.mxu0 %v5639_v16  ;;  %v6155_v25 = vand.u32 4294901760, %v5649_v32 }
 0x379   :  { %3893 = vmatprep.subr.mxu1 %v3076_v7  ;;  %v2971_v24 = vand.u32 4294901760, %v2970_v6  ;;  %v5669_v7 = vsub.f32 %v2757_v12, %v5651_v60  ;;  %6353 = vst [vmem:[#allocation37_spill] sm:$0xff] %v5671_v1  ;;  %3862 = vmatpush3.msra.mxu0 %v5651_v60  ;;  %v5689_v6 = vsub.f32 %v2756_v40, %v5671_v1  ;;  %v2754_v40 = vld [vmem:[%s6057_s9 + $0x18] sm:$0xff] }
 0x37a   :  { %6350 = vst [vmem:[#allocation23_spill] sm:$0xff] %v5659_v52  ;;  %3894 = vmatpush3.msra.mxu1 %v2964_v47  ;;  %v3089_v4 = vsub.f32 %v5637_v11, %v6153_v35  ;;  %v6159_v34 = vand.u32 4294901760, %v5659_v52  ;;  %v5681_v47 = vand.u32 4294901760, %v2771_v28  ;;  %3863 = vmatprep.subr.mxu0 %v5661_v3  ;;  %v2977_v12 = vsub.f32 %v5649_v32, %v6155_v25 }
 0x37b   :  { %6352 = vst [vmem:[#allocation24_spill] sm:$0xff] %v5669_v7  ;;  %3895 = vmatprep.subr.mxu1 %v3083_v38  ;;  %v6162_v38 = vand.u32 4294901760, %v5669_v7  ;;  %6356 = vst [vmem:[#allocation28_spill] sm:$0xff] %v5689_v6  ;;  %v5691_v35 = vand.u32 4294901760, %v2755_v10  ;;  %3864 = vmatpush3.msra.mxu0 %v5671_v1  ;;  %v6165_v25 = vand.u32 4294901760, %v5679_v53  ;;  %v6170_v49 = vand.u32 4294901760, %v5689_v6 }
 0x37c   :  { %6355 = vst [vmem:[#allocation39_spill] sm:$0xff] %v5681_v47  ;;  %3896 = vmatpush3.msra.mxu1 %v2971_v24  ;;  %v3090_v58 = vand.u32 4294901760, %v3089_v4  ;;  %v3096_v24 = vsub.f32 %v5659_v52, %v6159_v34  ;;  %v5702_v21 = vsub.f32 %v2771_v28, %v5681_v47  ;;  %3865 = vmatprep.subr.mxu0 %v5681_v47  ;;  %v2978_v48 = vand.u32 4294901760, %v2977_v12  ;;  %v2769_v28 = vld [vmem:[%s6057_s9 + $0x90] sm:$0xff] }
 0x37d   :  { %6357 = vst [vmem:[#allocation17_spill] sm:$0xff] %v5691_v35  ;;  %v2984_v4 = vsub.f32 %v5669_v7, %v6162_v38  ;;  %v5713_v34 = vsub.f32 %v2755_v10, %v5691_v35  ;;  %3866 = vmatpush3.msra.mxu0 %v5691_v35  ;;  %v3103_v12 = vsub.f32 %v5679_v53, %v6165_v25  ;;  %v5723_v38 = vand.u32 4294901760, %v2770_v14  ;;  %v2753_v10 = vld [vmem:[%s6057_s9 + $0x10] sm:$0xff]  ;;  %v2768_v25 = vld [vmem:[%s6057_s9 + $0x88] sm:$0xff] }
 0x37e   :  { %6358 = vst [vmem:[#allocation30_spill] sm:$0xff] %v5702_v21  ;;  %3897 = vmatprep.subr.mxu1 %v3090_v58  ;;  %v3097_v39 = vand.u32 4294901760, %v3096_v24  ;;  %v2991_v30 = vsub.f32 %v5689_v6, %v6170_v49  ;;  %v5732_v24 = vand.u32 4294901760, %v2754_v40  ;;  %v6362_v53 = vand.u32 4294901760, %v5702_v21  ;;  %v2752_v49 = vld [vmem:[%s6057_s9 + $0x8] sm:$0xff] }
 0x37f   :  { %6359 = vst [vmem:[#allocation32_spill] sm:$0xff] %v5713_v34  ;;  %6360 = vst [vmem:[#allocation34_spill] sm:$0xff] %v5723_v38  ;;  %3898 = vmatpush3.msra.mxu1 %v2978_v48  ;;  %v2985_v61 = vand.u32 4294901760, %v2984_v4  ;;  %v3104_v43 = vand.u32 4294901760, %v3103_v12  ;;  %v5741_v48 = vsub.f32 %v2770_v14, %v5723_v38  ;;  %v5743_v4 = vand.u32 4294901760, %v2769_v28  ;;  %3867 = vmatprep.subr.mxu0 %v5723_v38  ;;  %v2767_v14 = vld [vmem:[%s6057_s9 + $0x80] sm:$0xff] }
 0x380   :  { %6361 = vst [vmem:[#allocation36_spill] sm:$0xff] %v5732_v24  ;;  %3899 = vmatprep.subr.mxu1 %v3097_v39  ;;  %v3110_v7 = vsub.f32 %v5702_v21, %v6362_v53  ;;  %v2992_v58 = vand.u32 4294901760, %v2991_v30  ;;  %v6365_v39 = vand.u32 4294901760, %v5713_v34  ;;  %v5753_v6 = vsub.f32 %v2754_v40, %v5732_v24  ;;  %3868 = vmatpush3.msra.mxu0 %v5732_v24  ;;  %v2751_v40 = vld [vmem:[%s6057_s9] sm:$0xff] }
 0x381   :  { %6363 = vst [vmem:[#allocation38_spill] sm:$0xff] %v5741_v48  ;;  %6364 = vst [vmem:[#allocation40_spill] sm:$0xff] %v5743_v4  ;;  %3900 = vmatpush3.msra.mxu1 %v2985_v61  ;;  %v5755_v53 = vand.u32 4294901760, %v2753_v10  ;;  %v6183_v61 = vand.u32 4294901760, %v5741_v48  ;;  %v5763_v30 = vsub.f32 %v2769_v28, %v5743_v4  ;;  %v5765_v52 = vand.u32 4294901760, %v2768_v25  ;;  %3869 = vmatprep.subr.mxu0 %v5743_v4 }
 0x382   :  { %v2998_v12 = vsub.f32 %v5713_v34, %v6365_v39  ;;  %6366 = vst [vmem:[#allocation41_spill] sm:$0xff] %v5753_v6  ;;  %3901 = vmatprep.subr.mxu1 %v3104_v43  ;;  %v3111_v21 = vand.u32 4294901760, %v3110_v7  ;;  %v6188_v34 = vand.u32 4294901760, %v5753_v6  ;;  %v5775_v7 = vand.u32 4294901760, %v2752_v49 }
 0x383   :  { %6367 = vst [vmem:[#allocation18_spill] sm:$0xff] %v5755_v53  ;;  %6368 = vst [vmem:[#allocation43_spill] sm:$0xff] %v5763_v30  ;;  %3902 = vmatpush3.msra.mxu1 %v2992_v58  ;;  %v5773_v43 = vsub.f32 %v2753_v10, %v5755_v53  ;;  %3870 = vmatpush3.msra.mxu0 %v5755_v53  ;;  %v3117_v28 = vsub.f32 %v5741_v48, %v6183_v61  ;;  %v6191_v24 = vand.u32 4294901760, %v5763_v30 }
 0x384   :  { %6369 = vst [vmem:[#allocation42_spill] sm:$0xff] %v5765_v52  ;;  %v2999_v39 = vand.u32 4294901760, %v2998_v12  ;;  %6371 = vst [vmem:[#allocation45_spill] sm:$0xff] %v5775_v7  ;;  %3903 = vmatprep.subr.mxu1 %v3111_v21  ;;  %v5783_v4 = vsub.f32 %v2768_v25, %v5765_v52  ;;  %v5785_v58 = vand.u32 4294901760, %v2767_v14  ;;  %3871 = vmatprep.subr.mxu0 %v5765_v52  ;;  %v5795_v61 = vand.u32 4294901760, %v2751_v40 }
 0x385   :  { %6370 = vst [vmem:[#allocation44_spill] sm:$0xff] %v5773_v43  ;;  %v3005_v10 = vsub.f32 %v5753_v6, %v6188_v34  ;;  %v6194_v21 = vand.u32 4294901760, %v5773_v43  ;;  %v5793_v12 = vsub.f32 %v2752_v49, %v5775_v7  ;;  %3872 = vmatpush3.msra.mxu0 %v5775_v7  ;;  %v3118_v25 = vand.u32 4294901760, %v3117_v28 }
 0x386   :  { %6372 = vst [vmem:[#allocation46_spill] sm:$0xff] %v5783_v4  ;;  %6373 = vst [vmem:[#allocation47_spill] sm:$0xff] %v5785_v58  ;;  %3904 = vmatpush3.msra.mxu1 %v2999_v39  ;;  %v3124_v48 = vsub.f32 %v5763_v30, %v6191_v24  ;;  %v6197_v39 = vand.u32 4294901760, %v5783_v4  ;;  %v5803_v52 = vsub.f32 %v2767_v14, %v5785_v58  ;;  %3873 = vmatprep.subr.mxu0 %v5785_v58 }
 0x387   :  { %6374 = vst [vmem:[#allocation48_spill] sm:$0xff] %v5793_v12  ;;  %6375 = vst [vmem:[#allocation49_spill] sm:$0xff] %v5795_v61  ;;  %v3006_v34 = vand.u32 4294901760, %v3005_v10  ;;  %v3012_v49 = vsub.f32 %v5773_v43, %v6194_v21  ;;  %v6198_v6 = vand.u32 4294901760, %v5793_v12  ;;  %v5811_v28 = vsub.f32 %v2751_v40, %v5795_v61  ;;  %3874 = vmatpush3.msra.mxu0 %v5795_v61  ;;  %v1831_v61 = vld [vmem:[#allocation12] sm:$0x3] }
 0x388   :  { %6376 = vst [vmem:[#allocation50_spill] sm:$0xff] %v5803_v52  ;;  %3905 = vmatprep.subr.mxu1 %v3118_v25  ;;  %v3125_v24 = vand.u32 4294901760, %v3124_v48  ;;  %v3131_v14 = vsub.f32 %v5783_v4, %v6197_v39  ;;  %v6202_v30 = vand.u32 4294901760, %v5803_v52  ;;  %3919 = vmatprep.subr.mxu0 %v5426_v2  ;;  %v1833_v2 = vlaneseq }
 0x389   :  { %6377 = vst [vmem:[#allocation51_spill] sm:$0xff] %v5811_v28  ;;  %3906 = vmatpush3.msra.mxu1 %v3006_v34  ;;  %v3013_v10 = vand.u32 4294901760, %v3012_v49  ;;  %v3019_v21 = vsub.f32 %v5793_v12, %v6198_v6  ;;  %v6209_v40 = vand.u32 4294901760, %v5811_v28 }
 0x38a   :  { %3907 = vmatprep.subr.mxu1 %v3125_v24  ;;  %v3132_v43 = vand.u32 4294901760, %v3131_v14  ;;  %v3138_v48 = vsub.f32 %v5803_v52, %v6202_v30 }
 0x38b   :  { %3908 = vmatpush3.msra.mxu1 %v3013_v10  ;;  %v3020_v25 = vand.u32 4294901760, %v3019_v21  ;;  %v3026_v39 = vsub.f32 %v5811_v28, %v6209_v40  ;;  %v1834_v10 = vshrl.u32 %v1833_v2, 7 }
 0x38c   :  { %3909 = vmatprep.subr.mxu1 %v3132_v43  ;;  %v3139_v34 = vand.u32 4294901760, %v3138_v48 }
 0x38d   :  { %3910 = vmatpush3.msra.mxu1 %v3020_v25  ;;  %v3027_v49 = vand.u32 4294901760, %v3026_v39  ;;  %v1835_v4 = vsub.s32 0, %v1834_v10  ;;  %v1839_v43 = vsub.s32 1, %v1834_v10 }
 0x38e   :  { %3911 = vmatprep.subr.mxu1 %v3139_v34 }
 0x38f   :  { %3912 = vmatpush3.msra.mxu1 %v3027_v49  ;;  %v1836_v25 = vrot.slane %v1831_v61, %v1835_v4  ;;  %v1840_v49 = vrot.slane %v1831_v61, %v1839_v43 }
 0x390   :  { %3957 = vmatprep.subr.mxu1 %v5415_v17 }
 0x3d7   :  { %v2189_v24 = vpop.f32.mrf.mxu1 }
 0x3d9   :  { %v2191_v14 = vpop.f32.mrf.mxu1 }
 0x3db   :  { %v2196_v12 = vpop.f32.mrf.mxu1 }
 0x3dd   :  { %v2198_v21 = vpop.f32.mrf.mxu1 }
 0x3df   :  { %v1946_v6 = vpop.f32.mrf.mxu0 }
 0x3e0   :  { %v1947_v28 = vadd.f32 %v1946_v6, %v1836_v25 }
 0x3e1   :  { %v1948_v30 = vpop.f32.mrf.mxu0 }
 0x3e2   :  { %v1949_v7 = vadd.f32 %v1948_v30, %v1840_v49  ;;  %v2190_v32 = vadd.f32 %v2189_v24, %v1947_v28 }
 0x3e4   :  { %v1957_v52 = vpop.f32.mrf.mxu0  ;;  %v2192_v51 = vadd.f32 %v2191_v14, %v1949_v7 }
 0x3e5   :  { %v1958_v53 = vadd.f32 %v1957_v52, %v1836_v25 }
 0x3e6   :  { %v1959_v48 = vpop.f32.mrf.mxu0 }
 0x3e7   :  { %v1960_v2 = vadd.f32 %v1959_v48, %v1840_v49  ;;  %v2197_v1 = vadd.f32 %v2196_v12, %v1958_v53 }
 0x3e9   :  { %v2199_v4 = vadd.f32 %v2198_v21, %v1960_v2 }
 0x3f8   :  { %v2447_v40 = vpop.f32.mrf.mxu1 }
 0x3fa   :  { %v2449_v39 = vpop.f32.mrf.mxu1 }
 0x3fd   :  { %v2456_v17 = vpop.f32.mrf.mxu1 }
 0x3ff   :  { %v2458_v38 = vpop.f32.mrf.mxu1 }
 0x402   :  { %v2333_v34 = vpop.f32.mrf.mxu0 }
 0x403   :  { %v2334_v35 = vadd.f32 %v2333_v34, %v2190_v32 }
 0x404   :  { %v2335_v58 = vpop.f32.mrf.mxu0 }
 0x405   :  { %v2336_v0 = vadd.f32 %v2335_v58, %v2192_v51  ;;  %v2448_v3 = vadd.f32 %v2447_v40, %v2334_v35 }
 0x407   :  { %v2341_v11 = vpop.f32.mrf.mxu0  ;;  %v2450_v60 = vadd.f32 %v2449_v39, %v2336_v0 }
 0x408   :  { %v2342_v36 = vadd.f32 %v2341_v11, %v2197_v1 }
 0x409   :  { %v2343_v10 = vpop.f32.mrf.mxu0 }
 0x40a   :  { %v2344_v6 = vadd.f32 %v2343_v10, %v2199_v4  ;;  %v2457_v24 = vadd.f32 %v2456_v17, %v2342_v36 }
 0x40c   :  { %v2459_v51 = vadd.f32 %v2458_v38, %v2344_v6 }
 0x41c   :  { %v2735_v47 = vpop.f32.mrf.mxu1 }
 0x41e   :  { %v2737_v29 = vpop.f32.mrf.mxu1 }
 0x420   :  { %v2742_v25 = vpop.f32.mrf.mxu1 }
 0x422   :  { %v2744_v12 = vpop.f32.mrf.mxu1 }
 0x424   :  { %v2624_v61 = vpop.f32.mrf.mxu0 }
 0x425   :  { %v2625_v43 = vadd.f32 %v2624_v61, %v2448_v3 }
 0x426   :  { %v2626_v30 = vpop.f32.mrf.mxu0 }
 0x427   :  { %v2736_v52 = vadd.f32 %v2735_v47, %v2625_v43  ;;  %v2627_v28 = vadd.f32 %v2626_v30, %v2450_v60 }
 0x428   :  { %v2631_v48 = vpop.f32.mrf.mxu0 }
 0x429   :  { %v2747_v32 = vmax.f32 %v2736_v52, 0.0  ;;  %v2738_v7 = vadd.f32 %v2737_v29, %v2627_v28  ;;  %v2632_v14 = vadd.f32 %v2631_v48, %v2457_v24  ;;  %v6381_v24 = vld [vmem:[#allocation33_spill] sm:$0xff]  ;;  %v6383_v48 = vld [vmem:[#allocation35_spill] sm:$0xff] }
 0x42a   :  { %v2633_v53 = vpop.f32.mrf.mxu0 }
 0x42b   :  { %v5830_v58 = vand.u32 4294901760, %v2747_v32  ;;  %v2748_v11 = vmax.f32 %v2738_v7, 0.0  ;;  %v2743_v35 = vadd.f32 %v2742_v25, %v2632_v14  ;;  %v2634_v1 = vadd.f32 %v2633_v53, %v2459_v51  ;;  %v6382_v25 = vld [vmem:[#allocation27_spill] sm:$0xff]  ;;  %v6385_v7 = vld [vmem:[#allocation37_spill] sm:$0xff] }
 0x42c   :  { %v6386_v14 = vld [vmem:[#allocation29_spill] sm:$0xff]  ;;  %v6387_v51 = vld [vmem:[#allocation39_spill] sm:$0xff] }
 0x42d   :  { %6378 = vst [vmem:[#allocation52_spill] sm:$0xff] %v5830_v58  ;;  %v5833_v3 = vsub.f32 %v2747_v32, %v5830_v58  ;;  %v5835_v0 = vand.u32 4294901760, %v2748_v11  ;;  %v2749_v60 = vmax.f32 %v2743_v35, 0.0  ;;  %v2745_v17 = vadd.f32 %v2744_v12, %v2634_v1  ;;  %v6384_v32 = vld [vmem:[#allocation20_spill] sm:$0xff]  ;;  %v6388_v53 = vld [vmem:[#allocation21_spill] sm:$0xff]  ;;  %v6390_v35 = vld [vmem:[#allocation31_spill] sm:$0xff] }
 0x42e   :  { %v6391_v1 = vld [vmem:[#allocation34_spill] sm:$0xff] }
 0x42f   :  { %v2894_v36 = vand.u32 4294901760, %v5833_v3  ;;  %v2887_v29 = vsub.f32 %v2748_v11, %v5835_v0  ;;  %v5839_v47 = vand.u32 4294901760, %v2749_v60  ;;  %v2750_v38 = vmax.f32 %v2745_v17, 0.0  ;;  %3142 = vmatprep.mubr.f32.mxu1 %v5835_v0  ;;  %v6389_v11 = vld [vmem:[#allocation17_spill] sm:$0xff]  ;;  %v6392_v12 = vld [vmem:[#allocation22_spill] sm:$0xff]  ;;  %v6394_v17 = vld [vmem:[#allocation23_spill] sm:$0xff] }
 0x430   :  { %3144 = vmatmul.mubr.f32.vlgmr.msra.gmra.mxu1 %v5830_v58  ;;  %v6410_v58 = vld [vmem:[#allocation43_spill] sm:$0xff] }
 0x431   :  { %6379 = vst [vmem:[#allocation53_spill] sm:$0xff] %v5839_v47  ;;  %v5844_v40 = vsub.f32 %v2749_v60, %v5839_v47  ;;  %v5846_v21 = vand.u32 4294901760, %v2750_v38  ;;  %3958 = vmatpush3.msra.mxu1 %v5420_v33  ;;  %v2888_v39 = vand.u32 4294901760, %v2887_v29  ;;  %v2895_v34 = vsub.f32 %v5833_v3, %v2894_v36  ;;  %v6393_v60 = vld [vmem:[#allocation36_spill] sm:$0xff] }
 0x432   :  { %3959 = vmatprep.subr.mxu1 %v5428_v41 }
 0x433   :  { %6380 = vst [vmem:[#allocation54_spill] sm:$0xff] %v5846_v21  ;;  %v5854_v49 = vsub.f32 %v2750_v38, %v5846_v21  ;;  %3960 = vmatpush3.msra.mxu1 %v5437_v57  ;;  %3149 = vmatprep.mubr.f32.mxu1 %v5846_v21  ;;  %v2889_v2 = vsub.f32 %v2887_v29, %v2888_v39  ;;  %v6243_v10 = vand.u32 4294901760, %v5844_v40  ;;  %v2896_v6 = vand.u32 4294901760, %v2895_v34  ;;  %v6396_v38 = vld [vmem:[#allocation24_spill] sm:$0xff]  ;;  %v6398_v34 = vld [vmem:[#allocation25_spill] sm:$0xff] }
 0x434   :  { %3961 = vmatprep.subr.mxu1 %v5447_v23  ;;  %3151 = vmatmul.mubr.f32.gmra.mxu1 %v5839_v47  ;;  %v6408_v47 = vld [vmem:[#allocation41_spill] sm:$0xff] }
 0x435   :  { %3962 = vmatpush3.msra.mxu1 %v5457_v9  ;;  %3402 = vmatprep.mubr.f32.mxu1 %v2888_v39  ;;  %v2890_v4 = vand.u32 4294901760, %v2889_v2  ;;  %v6244_v61 = vand.u32 4294901760, %v5854_v49  ;;  %v2910_v30 = vsub.f32 %v5844_v40, %v6243_v10  ;;  %v6397_v39 = vld [vmem:[#allocation18_spill] sm:$0xff]  ;;  %v6409_v21 = vand.u32 4294901760, %v5854_v49 }
 0x436   :  { %3963 = vmatprep.subr.mxu1 %v5473_v19  ;;  %v6399_v2 = vld [vmem:[#allocation42_spill] sm:$0xff] }
 0x437   :  { %3964 = vmatpush3.msra.mxu1 %v5483_v31  ;;  %2891 = vmatprep.mubr.f32.mxu0 %v2890_v4  ;;  %v2904_v43 = vsub.f32 %v5854_v49, %v6244_v61  ;;  %v2911_v28 = vand.u32 4294901760, %v2910_v30  ;;  %v6400_v4 = vld [vmem:[#allocation28_spill] sm:$0xff]  ;;  %v6403_v30 = vld [vmem:[#allocation47_spill] sm:$0xff]  ;;  %v6406_v10 = vld [vmem:[#allocation38_spill] sm:$0xff] }
 0x438   :  { %3965 = vmatprep.subr.mxu1 %v5515_v27  ;;  %2897 = vmatmul.mubr.f32.vlgmr.msra.gmra.mxu0 %v2896_v6  ;;  %v6401_v6 = vld [vmem:[#allocation45_spill] sm:$0xff]  ;;  %v6407_v61 = vld [vmem:[#allocation26_spill] sm:$0xff] }
 0x439   :  { %3920 = vmatpush3.msra.mxu0 %v5435_v46  ;;  %3966 = vmatpush3.msra.mxu1 %v5524_v62  ;;  %v2905_v52 = vand.u32 4294901760, %v2904_v43  ;;  %v6402_v43 = vld [vmem:[#allocation30_spill] sm:$0xff] }
 0x43a   :  { %3921 = vmatprep.subr.mxu0 %v5445_v50  ;;  %3967 = vmatprep.subr.mxu1 %v5535_v59 }
 0x43b   :  { %3922 = vmatpush3.msra.mxu0 %v5455_v20  ;;  %3968 = vmatpush3.msra.mxu1 %v5547_v22 }
 0x43c   :  { %2906 = vmatprep.mubr.f32.mxu0 %v2905_v52  ;;  %3923 = vmatprep.subr.mxu0 %v5471_v45  ;;  %v6404_v52 = vld [vmem:[#allocation32_spill] sm:$0xff] }
 0x43d   :  { %3969 = vmatprep.subr.mxu1 %v5557_v18  ;;  %2912 = vmatmul.mubr.f32.gmra.mxu0 %v2911_v28  ;;  %v6405_v28 = vld [vmem:[#allocation49_spill] sm:$0xff] }
 0x43e   :  { %3924 = vmatpush3.msra.mxu0 %v5481_v5  ;;  %3970 = vmatpush3.msra.mxu1 %v5567_v54 }
 0x43f   :  { %3925 = vmatprep.subr.mxu0 %v5494_v56  ;;  %3286 = vmatprep.mubr.f32.mxu0 %v2887_v29  ;;  %v6395_v29 = vld [vmem:[#allocation40_spill] sm:$0xff] }
 0x440   :  { %3971 = vmatprep.subr.mxu1 %v5577_v15  ;;  %3926 = vmatpush3.msra.mxu0 %v5505_v55 }
 0x441   :  { %3972 = vmatpush3.msra.mxu1 %v5587_v42  ;;  %3927 = vmatprep.subr.mxu0 %v5533_v37 }
 0x442   :  { %3973 = vmatprep.subr.mxu1 %v5619_v8  ;;  %3928 = vmatpush3.msra.mxu0 %v5545_v13 }
 0x443   :  { %3974 = vmatpush3.msra.mxu1 %v5628_v63  ;;  %3929 = vmatprep.subr.mxu0 %v5555_v26 }
 0x444   :  { %3975 = vmatprep.subr.mxu1 %v5639_v16  ;;  %3930 = vmatpush3.msra.mxu0 %v5565_v44 }
 0x445   :  { %3976 = vmatpush3.msra.mxu1 %v6381_v24  ;;  %3931 = vmatprep.subr.mxu0 %v6382_v25 }
 0x446   :  { %3977 = vmatprep.subr.mxu1 %v6383_v48  ;;  %3932 = vmatpush3.msra.mxu0 %v6384_v32 }
 0x447   :  { %3978 = vmatpush3.msra.mxu1 %v6385_v7  ;;  %3933 = vmatprep.subr.mxu0 %v6386_v14 }
 0x448   :  { %3979 = vmatprep.subr.mxu1 %v6387_v51  ;;  %3934 = vmatpush3.msra.mxu0 %v6388_v53 }
 0x449   :  { %3980 = vmatpush3.msra.mxu1 %v6389_v11  ;;  %3935 = vmatprep.subr.mxu0 %v6390_v35 }
 0x44a   :  { %3981 = vmatprep.subr.mxu1 %v6391_v1  ;;  %3936 = vmatpush3.msra.mxu0 %v6392_v12 }
 0x44b   :  { %3982 = vmatpush3.msra.mxu1 %v6393_v60  ;;  %3937 = vmatprep.subr.mxu0 %v6394_v17 }
 0x44c   :  { %3983 = vmatprep.subr.mxu1 %v6395_v29  ;;  %3938 = vmatpush3.msra.mxu0 %v6396_v38 }
 0x44d   :  { %3984 = vmatpush3.msra.mxu1 %v6397_v39  ;;  %3939 = vmatprep.subr.mxu0 %v6398_v34 }
 0x44e   :  { %3985 = vmatprep.subr.mxu1 %v6399_v2  ;;  %3940 = vmatpush3.msra.mxu0 %v6400_v4 }
 0x44f   :  { %3986 = vmatpush3.msra.mxu1 %v6401_v6  ;;  %3941 = vmatprep.subr.mxu0 %v6402_v43 }
 0x450   :  { %3987 = vmatprep.subr.mxu1 %v6403_v30  ;;  %3942 = vmatpush3.msra.mxu0 %v6404_v52  ;;  %v6411_v52 = vld [vmem:[#allocation44_spill] sm:$0xff] }
 0x451   :  { %3988 = vmatpush3.msra.mxu1 %v6405_v28  ;;  %3943 = vmatprep.subr.mxu0 %v6406_v10  ;;  %v6412_v10 = vld [vmem:[#allocation46_spill] sm:$0xff] }
 0x452   :  { %3406 = vmatmul.mubr.f32.vlgmr.msra.gmra.mxu1 %v2894_v36  ;;  %4033 = vmatprep.subr.mxu1 %v6407_v61  ;;  %v6413_v36 = vand.u32 4294901760, %v5844_v40  ;;  %v6414_v61 = vld [vmem:[#allocation48_spill] sm:$0xff] }
 0x453   :  { %3944 = vmatpush3.msra.mxu0 %v6408_v47  ;;  %3413 = vmatprep.mubr.f32.mxu1 %v6409_v21 }
 0x454   :  { %4034 = vmatpush3.msra.mxu1 %v5420_v33  ;;  %3945 = vmatprep.subr.mxu0 %v6410_v58  ;;  %v6415_v33 = vld [vmem:[#allocation50_spill] sm:$0xff] }
 0x455   :  { %4035 = vmatprep.subr.mxu1 %v5428_v41  ;;  %3946 = vmatpush3.msra.mxu0 %v6411_v52  ;;  %v6416_v41 = vld [vmem:[#allocation51_spill] sm:$0xff] }
 0x456   :  { %4036 = vmatpush3.msra.mxu1 %v5437_v57  ;;  %3947 = vmatprep.subr.mxu0 %v6412_v10  ;;  %v6417_v57 = vld [vmem:[#allocation19_spill] sm:$0xff] }
 0x457   :  { %3417 = vmatmul.mubr.f32.gmra.mxu1 %v6413_v36  ;;  %4037 = vmatprep.subr.mxu1 %v5447_v23  ;;  %v6418_v21 = vand.u32 4294901760, %v6417_v57  ;;  %v6419_v23 = vand.u32 4294901760, %v5435_v46  ;;  %v6423_v46 = vand.u32 4294901760, %v5481_v5  ;;  %v6427_v5 = vand.u32 4294901760, %v5545_v13 }
 0x458   :  { %3948 = vmatpush3.msra.mxu0 %v6414_v61  ;;  %4038 = vmatpush3.msra.mxu1 %v5457_v9  ;;  %v6420_v9 = vand.u32 4294901760, %v5445_v50  ;;  %v6424_v50 = vand.u32 4294901760, %v5494_v56  ;;  %v6428_v56 = vand.u32 4294901760, %v5555_v26  ;;  %v6434_v13 = vand.u32 4294901760, %v6390_v35 }
 0x459   :  { %3694 = vmatprep.mubr.f32.mxu1 %v5835_v0  ;;  %3949 = vmatprep.subr.mxu0 %v6415_v33  ;;  %v6436_v26 = vand.u32 4294901760, %v6394_v17 }
 0x45a   :  { %4039 = vmatprep.subr.mxu1 %v5473_v19  ;;  %3950 = vmatpush3.msra.mxu0 %v6416_v41  ;;  %v6421_v19 = vand.u32 4294901760, %v5455_v20  ;;  %v6425_v20 = vand.u32 4294901760, %v5505_v55  ;;  %v6429_v55 = vand.u32 4294901760, %v5565_v44  ;;  %v6438_v44 = vand.u32 4294901760, %v6398_v34  ;;  %v3722_v34 = vld [vmem:[%s6058_s10] ss:$0 sm:$0xff] }
 0x45b   :  { %4040 = vmatpush3.msra.mxu1 %v5483_v31  ;;  %3289 = vmatmul.mubr.f32.vlgmr.msra.gmra.mxu0 %v5833_v3  ;;  %v6422_v31 = vand.u32 4294901760, %v5471_v45  ;;  %v6426_v45 = vand.u32 4294901760, %v5533_v37  ;;  %v6432_v37 = vand.u32 4294901760, %v6386_v14  ;;  %v6445_v3 = vld [vmem:[#allocation52_spill] sm:$0xff] }
 0x45c   :  { %3995 = vmatprep.subr.mxu0 %v6418_v21  ;;  %4041 = vmatprep.subr.mxu1 %v5515_v27  ;;  %v6430_v27 = vand.u32 4294901760, %v6382_v25  ;;  %v6450_v25 = vand.u32 4294901760, %v6412_v10 }
 0x45d   :  { %3295 = vmatprep.mubr.f32.mxu0 %v5854_v49  ;;  %3996 = vmatpush3.msra.mxu0 %v6419_v23  ;;  %v6448_v49 = vand.u32 4294901760, %v6410_v58 }
 0x45e   :  { %4042 = vmatpush3.msra.mxu1 %v5524_v62  ;;  %3997 = vmatprep.subr.mxu0 %v6420_v9  ;;  %v6431_v62 = vand.u32 4294901760, %v6384_v32  ;;  %v6452_v32 = vand.u32 4294901760, %v6414_v61 }
 0x45f   :  { %4043 = vmatprep.subr.mxu1 %v5535_v59  ;;  %3998 = vmatpush3.msra.mxu0 %v6421_v19  ;;  %v6433_v59 = vand.u32 4294901760, %v6388_v53 }
 0x460   :  { %4044 = vmatpush3.msra.mxu1 %v5547_v22  ;;  %3298 = vmatmul.mubr.f32.gmra.mxu0 %v5844_v40  ;;  %v6435_v22 = vand.u32 4294901760, %v6392_v12  ;;  %v6447_v40 = vld [vmem:[#allocation54_spill] sm:$0xff] }
 0x461   :  { %3999 = vmatprep.subr.mxu0 %v6422_v31  ;;  %4045 = vmatprep.subr.mxu1 %v5557_v18  ;;  %v6437_v18 = vand.u32 4294901760, %v6396_v38 }
 0x462   :  { %4000 = vmatpush3.msra.mxu0 %v6423_v46  ;;  %3583 = vmatprep.mubr.f32.mxu0 %v5835_v0  ;;  %v6446_v0 = vand.u32 4294901760, %v6408_v47  ;;  %v6454_v47 = vand.u32 4294901760, %v6416_v41 }
 0x463   :  { %4046 = vmatpush3.msra.mxu1 %v5567_v54  ;;  %4001 = vmatprep.subr.mxu0 %v6424_v50  ;;  %v6439_v54 = vand.u32 4294901760, %v6400_v4 }
 0x464   :  { %4047 = vmatprep.subr.mxu1 %v5577_v15  ;;  %4002 = vmatpush3.msra.mxu0 %v6425_v20  ;;  %v6440_v15 = vand.u32 4294901760, %v6402_v43 }
 0x465   :  { %4048 = vmatpush3.msra.mxu1 %v5587_v42  ;;  %4003 = vmatprep.subr.mxu0 %v6426_v45  ;;  %v6441_v42 = vld [vmem:[#allocation32_spill] sm:$0xff] }
 0x466   :  { %4049 = vmatprep.subr.mxu1 %v5619_v8  ;;  %4004 = vmatpush3.msra.mxu0 %v6427_v5  ;;  %v6442_v8 = vand.u32 4294901760, %v6441_v42 }
 0x467   :  { %4050 = vmatpush3.msra.mxu1 %v5628_v63  ;;  %4005 = vmatprep.subr.mxu0 %v6428_v56  ;;  %v6443_v63 = vld [vmem:[#allocation38_spill] sm:$0xff] }
 0x468   :  { %4051 = vmatprep.subr.mxu1 %v5639_v16  ;;  %4006 = vmatpush3.msra.mxu0 %v6429_v55  ;;  %v6444_v16 = vand.u32 4294901760, %v6443_v63 }
 0x469   :  { %4052 = vmatpush3.msra.mxu1 %v6381_v24  ;;  %4007 = vmatprep.subr.mxu0 %v6430_v27  ;;  %v6449_v24 = vand.u32 4294901760, %v6411_v52 }
 0x46a   :  { %4053 = vmatprep.subr.mxu1 %v6383_v48  ;;  %4008 = vmatpush3.msra.mxu0 %v6431_v62  ;;  %v6451_v48 = vld [vmem:[#allocation53_spill] sm:$0xff] }
 0x46b   :  { %4054 = vmatpush3.msra.mxu1 %v6385_v7  ;;  %4009 = vmatprep.subr.mxu0 %v6432_v37  ;;  %v6453_v7 = vand.u32 4294901760, %v6415_v33 }
 0x46c   :  { %4055 = vmatprep.subr.mxu1 %v6387_v51  ;;  %4010 = vmatpush3.msra.mxu0 %v6433_v59 }
 0x46d   :  { %4056 = vmatpush3.msra.mxu1 %v6389_v11  ;;  %4011 = vmatprep.subr.mxu0 %v6434_v13 }
 0x46e   :  { %4057 = vmatprep.subr.mxu1 %v6391_v1  ;;  %4012 = vmatpush3.msra.mxu0 %v6435_v22 }
 0x46f   :  { %4058 = vmatpush3.msra.mxu1 %v6393_v60  ;;  %4013 = vmatprep.subr.mxu0 %v6436_v26 }
 0x470   :  { %4059 = vmatprep.subr.mxu1 %v6395_v29  ;;  %4014 = vmatpush3.msra.mxu0 %v6437_v18 }
 0x471   :  { %4060 = vmatpush3.msra.mxu1 %v6397_v39  ;;  %4015 = vmatprep.subr.mxu0 %v6438_v44 }
 0x472   :  { %4061 = vmatprep.subr.mxu1 %v6399_v2  ;;  %4016 = vmatpush3.msra.mxu0 %v6439_v54 }
 0x473   :  { %4062 = vmatpush3.msra.mxu1 %v6401_v6  ;;  %4017 = vmatprep.subr.mxu0 %v6440_v15 }
 0x474   :  { %4063 = vmatprep.subr.mxu1 %v6403_v30  ;;  %4018 = vmatpush3.msra.mxu0 %v6442_v8 }
 0x475   :  { %4064 = vmatpush3.msra.mxu1 %v6405_v28  ;;  %4019 = vmatprep.subr.mxu0 %v6444_v16 }
 0x476   :  { %3696 = vmatmul.mubr.f32.vlgmr.msra.gmra.mxu1 %v6445_v3  ;;  %4020 = vmatpush3.msra.mxu0 %v6446_v0 }
 0x477   :  { %3701 = vmatprep.mubr.f32.mxu1 %v6447_v40  ;;  %4021 = vmatprep.subr.mxu0 %v6448_v49 }
 0x478   :  { %4022 = vmatpush3.msra.mxu0 %v6449_v24 }
 0x479   :  { %4023 = vmatprep.subr.mxu0 %v6450_v25 }
 0x47a   :  { %3703 = vmatmul.mubr.f32.gmra.mxu1 %v6451_v48  ;;  %4024 = vmatpush3.msra.mxu0 %v6452_v32 }
 0x47b   :  { %4025 = vmatprep.subr.mxu0 %v6453_v7 }
 0x47c   :  { %4026 = vmatpush3.msra.mxu0 %v6454_v47 }
 0x47d   :  { %3585 = vmatmul.mubr.f32.vlgmr.msra.gmra.mxu0 %v6445_v3 }
 0x47e   :  { %3590 = vmatprep.mubr.f32.mxu0 %v6447_v40 }
 0x481   :  { %3592 = vmatmul.mubr.f32.gmra.mxu0 %v6451_v48 }
 0x4f0   :  { %v3913_v58 = vpop.f32.mrf.mxu1 }
 0x4f2   :  { %v3914_v10 = vpop.f32.mrf.mxu1 }
 0x4f3   :  { %v3915_v52 = vadd.f32 %v3914_v10, %v3913_v58 }
 0x4f4   :  { %v3916_v51 = vpop.f32.mrf.mxu1 }
 0x4f6   :  { %v3917_v11 = vpop.f32.mrf.mxu1 }
 0x4f7   :  { %v3918_v57 = vadd.f32 %v3917_v11, %v3916_v51 }
 0x4f8   :  { %v3875_v14 = vpop.f32.mrf.mxu0 }
 0x4fa   :  { %v3876_v53 = vpop.f32.mrf.mxu0 }
 0x4fb   :  { %v3877_v39 = vadd.f32 %v3876_v53, %v3875_v14 }
 0x4fd   :  { %v3878_v35 = vpop.f32.mrf.mxu0  ;;  %v2899_v6 = vadd.f32 %v3877_v39, %v3722_v34 }
 0x4ff   :  { %v3879_v12 = vpop.f32.mrf.mxu0  ;;  %v3146_v33 = vadd.f32 %v3915_v52, %v2899_v6 }
 0x500   :  { %v3880_v43 = vadd.f32 %v3879_v12, %v3878_v35 }
 0x502   :  { %v2914_v61 = vadd.f32 %v3880_v43, %v3722_v34 }
 0x504   :  { %v3153_v31 = vadd.f32 %v3918_v57, %v2914_v61 }
 0x512   :  { %v3989_v1 = vpop.f32.mrf.mxu1 }
 0x514   :  { %v3990_v60 = vpop.f32.mrf.mxu1 }
 0x515   :  { %v3991_v19 = vadd.f32 %v3990_v60, %v3989_v1 }
 0x517   :  { %v3992_v29 = vpop.f32.mrf.mxu1 }
 0x519   :  { %v3993_v2 = vpop.f32.mrf.mxu1 }
 0x51a   :  { %v3994_v55 = vadd.f32 %v3993_v2, %v3992_v29 }
 0x51b   :  { %v3951_v17 = vpop.f32.mrf.mxu0 }
 0x51d   :  { %v3952_v38 = vpop.f32.mrf.mxu0 }
 0x51e   :  { %v3953_v28 = vadd.f32 %v3952_v38, %v3951_v17 }
 0x520   :  { %v3954_v4 = vpop.f32.mrf.mxu0  ;;  %v3291_v21 = vadd.f32 %v3953_v28, %v3146_v33 }
 0x522   :  { %v3955_v36 = vpop.f32.mrf.mxu0  ;;  %v3408_v45 = vadd.f32 %v3991_v19, %v3291_v21 }
 0x523   :  { %v3956_v23 = vadd.f32 %v3955_v36, %v3954_v4 }
 0x525   :  { %v3300_v20 = vadd.f32 %v3956_v23, %v3153_v31 }
 0x527   :  { %v3419_v22 = vadd.f32 %v3994_v55, %v3300_v20 }
 0x536   :  { %v4065_v30 = vpop.f32.mrf.mxu1 }
 0x538   :  { %v4066_v41 = vpop.f32.mrf.mxu1 }
 0x539   :  { %v4067_v27 = vadd.f32 %v4066_v41, %v4065_v30 }
 0x53a   :  { %v4068_v46 = vpop.f32.mrf.mxu1 }
 0x53c   :  { %v4069_v37 = vpop.f32.mrf.mxu1 }
 0x53d   :  { %v4027_v9 = vpop.f32.mrf.mxu0  ;;  %v4070_v18 = vadd.f32 %v4069_v37, %v4068_v46 }
 0x53f   :  { %v4028_v50 = vpop.f32.mrf.mxu0 }
 0x540   :  { %v4029_v5 = vadd.f32 %v4028_v50, %v4027_v9 }
 0x541   :  { %v4030_v56 = vpop.f32.mrf.mxu0 }
 0x542   :  { %v3587_v62 = vadd.f32 %v4029_v5, %v3408_v45 }
 0x543   :  { %v4031_v59 = vpop.f32.mrf.mxu0 }
 0x544   :  { %v3698_v13 = vadd.f32 %v4067_v27, %v3587_v62  ;;  %v4032_v26 = vadd.f32 %v4031_v59, %v4030_v56 }
 0x546   :  { %3709 = vst.msk [vmem:[%s6059_s11] sm:$0xff] %vm3708_vm3, %v3698_v13  ;;  %v3594_v44 = vadd.f32 %v4032_v26, %v3419_v22 }
 0x548   :  { %v3705_v54 = vadd.f32 %v4070_v18, %v3594_v44 }
 0x54a   :  { %3710 = vst.msk [vmem:[%s6059_s11 + $0x8] sm:$0xff] %vm3708_vm3, %v3705_v54 }
 0x54b   :  { %3715 = vsyncpa [#allocation3], 1 }
 0x54c   :  { %3716 = vsyncpa [#allocation5], 1 }
 0x54d   :  { %3717 = vsyncpa [#allocation8], 1 }
 0x54e   :  { %3718 = vsyncpa [#allocation11], 1 }

</bundles_post_ra>
